<compile_context>
chip_gen: v5e
topology: v5e:2x2
jax: 0.10.0
libtpu: 0.0.40
codegen_flags: <defaults>
</compile_context>

<pallas_src>
import jax
import jax.numpy as jnp
from jax.experimental import pallas as pl
from jax.experimental.pallas import tpu as pltpu


# ----------------------------------------------------------------------------
# Fused kernel: one-hot embedding gather + 2-layer LSTM over time + FC + sigmoid.
# ----------------------------------------------------------------------------
def sentiment_kernel(ids_ref, emb_ref,
                     w1_ref, b1_ref, w2_ref, b2_ref,
                     wfc_ref, bfc_ref,
                     o_ref, hn_ref, cn_ref,
                     xh1_ref, xh2_ref):
    _, B, H = hn_ref.shape
    TB = ids_ref.shape[0]
    V, E = emb_ref.shape
    T = TB // B

    # ---- Embedding gather hoisted out of the time loop ----------------------
    # One-hot (T*B, V) bf16 @ (V, E) bf16 table on the otherwise-idle MXU; the
    # result is pre-cast to bf16 once (loop-invariant value).
    onehot = (ids_ref[...] ==
              jax.lax.broadcasted_iota(jnp.int32, (TB, V), 1)).astype(jnp.bfloat16)
    x_all = jnp.dot(onehot, emb_ref[...],
                    preferred_element_type=jnp.float32).astype(jnp.bfloat16)   # (T*B, E)

    # Weights / biases loaded once (loop-invariant).
    w1 = w1_ref[...]; b1 = b1_ref[...]
    w2 = w2_ref[...]; b2 = b2_ref[...]

    def gates_to_hc(gates, c):
        # Full-vreg nonlinearities over all 4H (=128) lanes, then slice per gate.
        sg = jax.nn.sigmoid(gates)
        tg = jnp.tanh(gates)
        i_g = sg[:, 0:H]
        f_g = sg[:, H:2 * H]
        g_g = tg[:, 2 * H:3 * H]
        o_g = sg[:, 3 * H:4 * H]
        c_new = f_g * c + i_g * g_g
        h_new = o_g * jnp.tanh(c_new)
        return h_new, c_new

    h1 = c1 = h2 = c2 = jnp.zeros((B, H), jnp.float32)

    # Static Python loop: T is small and concrete, so all ref indices / lane
    # slices are static; live-range growth is negligible at this size.
    # TODO(synk): for long sequences, skew the layers (layer1(t) || layer2(t-1))
    # to overlap the two cells' MXU+EUP latency per unrolled iteration.
    for t in range(T):
        # ---- layer 1: single fused [x_t | h1] @ W1 matmul ----
        xh1_ref[:, 0:E] = x_all[t * B:(t + 1) * B, :]
        xh1_ref[:, E:E + H] = h1.astype(jnp.bfloat16)
        g1 = jnp.dot(xh1_ref[...], w1, preferred_element_type=jnp.float32) + b1
        h1, c1 = gates_to_hc(g1, c1)
        # ---- layer 2 (inter-layer dropout p=0.2 is identity in eval mode) ----
        xh2_ref[:, 0:H] = h1.astype(jnp.bfloat16)
        xh2_ref[:, H:2 * H] = h2.astype(jnp.bfloat16)
        g2 = jnp.dot(xh2_ref[...], w2, preferred_element_type=jnp.float32) + b2
        h2, c2 = gates_to_hc(g2, c2)

    # o[:, -1, :] == top-layer h_n ; self.dropout (p=0.3) is identity in eval mode.
    logits = jnp.dot(h2.astype(wfc_ref.dtype), wfc_ref[...],
                     preferred_element_type=jnp.float32) + bfc_ref[...]
    o_ref[...] = jax.nn.sigmoid(logits).astype(o_ref.dtype)
    hn_ref[0] = h1.astype(hn_ref.dtype)
    hn_ref[1] = h2.astype(hn_ref.dtype)
    cn_ref[0] = c1.astype(cn_ref.dtype)
    cn_ref[1] = c2.astype(cn_ref.dtype)


# ----------------------------------------------------------------------------
# Wrapper: single grid-less pallas_call, everything resident in VMEM.
# ----------------------------------------------------------------------------
def sentiment_forward(params, x_ids):
    B, T = x_ids.shape
    V, E = params["embedding"].shape
    H = params["b1"].shape[1] // 4
    O = params["fc_w_t"].shape[1]
    N_LAYERS = 2

    # Row r = t*B + b so the in-kernel (T*B, E) gather result is time-major.
    ids2 = x_ids.astype(jnp.int32).T.reshape(T * B, 1)

    vmem = pl.BlockSpec(memory_space=pltpu.MemorySpace.VMEM)

    # TODO(synk): for production vocab sizes (esp. v7x's 64 MiB/TC VMEM) keep the
    # table in HBM (memory_space=pl.ANY) and double-buffer per-token DMA gathers
    # instead of the VMEM-resident table + one-hot matmul used here.
    # v7x note: at larger batch, add a leading grid axis with
    # dimension_semantics=("parallel",) to split the batch across both TensorCores;
    # at B=2 a single grid-less call on one core is optimal. Batch size is the main
    # performance knob for this latency-bound serial-T kernel.
    o, h_n, c_n = pl.pallas_call(
        sentiment_kernel,
        out_shape=(
            jax.ShapeDtypeStruct((B, O), jnp.float32),            # sigmoid(fc(h_last))
            jax.ShapeDtypeStruct((N_LAYERS, B, H), jnp.float32),  # h_n
            jax.ShapeDtypeStruct((N_LAYERS, B, H), jnp.float32),  # c_n
        ),
        in_specs=[vmem] * 8,
        out_specs=(vmem, vmem, vmem),
        scratch_shapes=[
            pltpu.VMEM((B, E + H), jnp.bfloat16),   # [x_t | h1] staging for layer 1
            pltpu.VMEM((B, 2 * H), jnp.bfloat16),   # [h1  | h2] staging for layer 2
        ],
    )(ids2, params["embedding"],
      params["w1"], params["b1"], params["w2"], params["b2"],
      params["fc_w_t"], params["fc_b"])
    return o, (h_n, c_n)


# ----------------------------------------------------------------------------
# Parameter init (deterministic, shapes follow the nn.Module __init__).
# LSTM weights pre-stacked to fused ([x|h], 4H) layout and cast to bf16 (MXU path);
# biases stay f32; embedding table stored bf16.
# ----------------------------------------------------------------------------
def init_params(key, vocab_size, output_size, hidden_size, embedding_size):
    H = hidden_size
    bound = 1.0 / (H ** 0.5)
    k = iter(jax.random.split(key, 11))

    params = {}
    params["embedding"] = jax.random.normal(
        next(k), (vocab_size, embedding_size), jnp.float32).astype(jnp.bfloat16)

    def lstm_layer(in_size):
        w_ih = jax.random.uniform(next(k), (4 * H, in_size), jnp.float32, -bound, bound)
        w_hh = jax.random.uniform(next(k), (4 * H, H), jnp.float32, -bound, bound)
        b_ih = jax.random.uniform(next(k), (4 * H,), jnp.float32, -bound, bound)
        b_hh = jax.random.uniform(next(k), (4 * H,), jnp.float32, -bound, bound)
        # Fused [x | h] weight: rows 0:in = W_ih^T, rows in:in+H = W_hh^T.
        w = jnp.concatenate([w_ih.T, w_hh.T], axis=0).astype(jnp.bfloat16)  # (in+H, 4H)
        return w, (b_ih + b_hh).reshape(1, 4 * H)                           # combined bias f32

    params["w1"], params["b1"] = lstm_layer(embedding_size)
    params["w2"], params["b2"] = lstm_layer(H)

    w_fc = jax.random.uniform(next(k), (output_size, H), jnp.float32, -bound, bound)
    b_fc = jax.random.uniform(next(k), (output_size,), jnp.float32, -bound, bound)
    params["fc_w_t"] = w_fc.T.astype(jnp.bfloat16)                # (H, output_size) bf16
    params["fc_b"] = b_fc.reshape(1, output_size)
    return params


# ----------------------------------------------------------------------------
# Pure-JAX reference (same bf16-rounded weights/activations) for a sanity check.
# ----------------------------------------------------------------------------
def sentiment_reference(params, x_ids):
    emb = jnp.take(params["embedding"].astype(jnp.float32),
                   x_ids.astype(jnp.int32), axis=0)               # (B, T, E), bf16 values
    B, T, _ = emb.shape
    H = params["b1"].shape[1] // 4

    def rdot(a, w_bf16):
        a_r = a.astype(jnp.bfloat16).astype(jnp.float32)
        return jnp.dot(a_r, w_bf16.astype(jnp.float32),
                       precision=jax.lax.Precision.HIGHEST)

    def cell(xh, c, w, b):
        gates = rdot(xh, w) + b
        i_g = jax.nn.sigmoid(gates[:, 0:H]); f_g = jax.nn.sigmoid(gates[:, H:2 * H])
        g_g = jnp.tanh(gates[:, 2 * H:3 * H]); o_g = jax.nn.sigmoid(gates[:, 3 * H:4 * H])
        c_new = f_g * c + i_g * g_g
        return o_g * jnp.tanh(c_new), c_new

    h1 = c1 = h2 = c2 = jnp.zeros((B, H), jnp.float32)
    for t in range(T):
        x_t = emb[:, t, :]
        h1, c1 = cell(jnp.concatenate([x_t, h1], axis=1), c1, params["w1"], params["b1"])
        h2, c2 = cell(jnp.concatenate([h1, h2], axis=1), c2, params["w2"], params["b2"])
    o = jax.nn.sigmoid(rdot(h2, params["fc_w_t"]) + params["fc_b"])
    return o, (jnp.stack([h1, h2], axis=0), jnp.stack([c1, c2], axis=0))


if __name__ == "__main__":
    vocab_size, output_size = 100, 1
    hidden_size, embedding_size, n_layers = 32, 64, 2
    B, T = 2, 8

    key = jax.random.PRNGKey(0)
    pkey, xkey = jax.random.split(key)
    params = init_params(pkey, vocab_size, output_size, hidden_size, embedding_size)
    x_ids = jax.random.randint(xkey, (B, T), 0, vocab_size, dtype=jnp.int32)

    forward = jax.jit(sentiment_forward)
    o, (h_n, c_n) = forward(params, x_ids)
    jax.block_until_ready((o, h_n, c_n))

    # Shape / range checks (forward semantics of the PyTorch module in eval mode).
    assert o.shape == (B, output_size)
    assert h_n.shape == (n_layers, B, hidden_size)
    assert c_n.shape == (n_layers, B, hidden_size)
    assert bool(jnp.all((o >= 0.0) & (o <= 1.0)))

    # Numerical sanity check vs. pure-JAX reference (bf16 weights in both paths).
    o_ref, (h_ref, c_ref) = sentiment_reference(params, x_ids)
    assert bool(jnp.allclose(o, o_ref, atol=1e-2))
    assert bool(jnp.allclose(h_n, h_ref, atol=1e-2))
    assert bool(jnp.allclose(c_n, c_ref, atol=1e-2))

    print("KERNEL_OK")
</pallas_src>

<mosaic_0001>
module attributes {stable_mosaic.version = 11 : i64} {
  func.func @sentiment_kernel(%arg0: memref<16x1xi32, #tpu.memory_space<vmem>>, %arg1: memref<100x64xbf16, #tpu.memory_space<vmem>>, %arg2: memref<96x128xbf16, #tpu.memory_space<vmem>>, %arg3: memref<1x128xf32, #tpu.memory_space<vmem>>, %arg4: memref<64x128xbf16, #tpu.memory_space<vmem>>, %arg5: memref<1x128xf32, #tpu.memory_space<vmem>>, %arg6: memref<32x1xbf16, #tpu.memory_space<vmem>>, %arg7: memref<1x1xf32, #tpu.memory_space<vmem>>, %arg8: memref<2x1xf32, #tpu.memory_space<vmem>>, %arg9: memref<2x2x32xf32, #tpu.memory_space<vmem>>, %arg10: memref<2x2x32xf32, #tpu.memory_space<vmem>>, %arg11: memref<2x96xbf16, #tpu.memory_space<vmem>>, %arg12: memref<2x64xbf16, #tpu.memory_space<vmem>>) attributes {dimension_semantics = [], scalar_prefetch = 0 : i64, scratch_operands = 2 : i64, tpu.core_type = #tpu.core_type<tc>} {
    %c0 = arith.constant 0 : index
    %c0_0 = arith.constant 0 : index
    %0 = vector.load %arg0[%c0, %c0_0] : memref<16x1xi32, #tpu.memory_space<vmem>>, vector<16x1xi32>
    %1 = tpu.iota {dimensions = array<i32: 1>} : vector<16x100xi32>
    %2 = vector.broadcast %0 : vector<16x1xi32> to vector<16x100xi32>
    %3 = arith.cmpi eq, %2, %1 : vector<16x100xi32>
    %4 = arith.extui %3 : vector<16x100xi1> to vector<16x100xi32>
    %5 = arith.sitofp %4 : vector<16x100xi32> to vector<16x100xf32>
    %6 = arith.truncf %5 : vector<16x100xf32> to vector<16x100xbf16>
    %c0_1 = arith.constant 0 : index
    %c0_2 = arith.constant 0 : index
    %7 = vector.load %arg1[%c0_1, %c0_2] : memref<100x64xbf16, #tpu.memory_space<vmem>>, vector<100x64xbf16>
    %cst = arith.constant dense<0.000000e+00> : vector<16x64xf32>
    %8 = tpu.matmul %6, %7, %cst {dimension_numbers = #tpu.dot_dimension_numbers<[1], [0], [0], [1], [0, 0, 1, 1], [], []>} : vector<16x100xbf16>, vector<100x64xbf16>, vector<16x64xf32> -> vector<16x64xf32>
    %9 = arith.truncf %8 : vector<16x64xf32> to vector<16x64xbf16>
    %c0_3 = arith.constant 0 : index
    %c0_4 = arith.constant 0 : index
    %10 = vector.load %arg2[%c0_3, %c0_4] : memref<96x128xbf16, #tpu.memory_space<vmem>>, vector<96x128xbf16>
    %c0_5 = arith.constant 0 : index
    %c0_6 = arith.constant 0 : index
    %11 = vector.load %arg3[%c0_5, %c0_6] : memref<1x128xf32, #tpu.memory_space<vmem>>, vector<1x128xf32>
    %c0_7 = arith.constant 0 : index
    %c0_8 = arith.constant 0 : index
    %12 = vector.load %arg4[%c0_7, %c0_8] : memref<64x128xbf16, #tpu.memory_space<vmem>>, vector<64x128xbf16>
    %c0_9 = arith.constant 0 : index
    %c0_10 = arith.constant 0 : index
    %13 = vector.load %arg5[%c0_9, %c0_10] : memref<1x128xf32, #tpu.memory_space<vmem>>, vector<1x128xf32>
    %cst_11 = arith.constant 0.000000e+00 : f32
    %14 = vector.broadcast %cst_11 : f32 to vector<2x32xf32>
    %15 = vector.extract_strided_slice %9 {offsets = [0, 0], sizes = [2, 64], strides = [1, 1]} : vector<16x64xbf16> to vector<2x64xbf16>
    %c0_12 = arith.constant 0 : index
    %c0_13 = arith.constant 0 : index
    %16 = vector.load %arg11[%c0_12, %c0_13] : memref<2x96xbf16, #tpu.memory_space<vmem>>, vector<2x64xbf16>
    tpu.vector_store %arg11[%c0_12, %c0_13], %15 {strides = array<i32>} : memref<2x96xbf16, #tpu.memory_space<vmem>>, vector<2x64xbf16>,
    %17 = arith.truncf %14 : vector<2x32xf32> to vector<2x32xbf16>
    %c0_14 = arith.constant 0 : index
    %c64 = arith.constant 64 : index
    %18 = vector.load %arg11[%c0_14, %c64] : memref<2x96xbf16, #tpu.memory_space<vmem>>, vector<2x32xbf16>
    tpu.vector_store %arg11[%c0_14, %c64], %17 {strides = array<i32>} : memref<2x96xbf16, #tpu.memory_space<vmem>>, vector<2x32xbf16>,
    %c0_15 = arith.constant 0 : index
    %c0_16 = arith.constant 0 : index
    %19 = vector.load %arg11[%c0_15, %c0_16] : memref<2x96xbf16, #tpu.memory_space<vmem>>, vector<2x96xbf16>
    %cst_17 = arith.constant dense<0.000000e+00> : vector<2x128xf32>
    %20 = tpu.matmul %19, %10, %cst_17 {dimension_numbers = #tpu.dot_dimension_numbers<[1], [0], [0], [1], [0, 0, 1, 1], [], []>} : vector<2x96xbf16>, vector<96x128xbf16>, vector<2x128xf32> -> vector<2x128xf32>
    %21 = vector.broadcast %11 : vector<1x128xf32> to vector<2x128xf32>
    %22 = arith.addf %20, %21 : vector<2x128xf32>
    %23 = arith.negf %22 : vector<2x128xf32>
    %24 = math.exp %23 : vector<2x128xf32>
    %cst_18 = arith.constant 1.000000e+00 : f32
    %25 = vector.broadcast %cst_18 : f32 to vector<2x128xf32>
    %26 = arith.addf %25, %24 : vector<2x128xf32>
    %27 = arith.divf %25, %26 : vector<2x128xf32>
    %28 = math.tanh %22 : vector<2x128xf32>
    %29 = vector.extract_strided_slice %27 {offsets = [0, 0], sizes = [2, 32], strides = [1, 1]} : vector<2x128xf32> to vector<2x32xf32>
    %30 = vector.extract_strided_slice %27 {offsets = [0, 32], sizes = [2, 32], strides = [1, 1]} : vector<2x128xf32> to vector<2x32xf32>
    %31 = vector.extract_strided_slice %28 {offsets = [0, 64], sizes = [2, 32], strides = [1, 1]} : vector<2x128xf32> to vector<2x32xf32>
    %32 = vector.extract_strided_slice %27 {offsets = [0, 96], sizes = [2, 32], strides = [1, 1]} : vector<2x128xf32> to vector<2x32xf32>
    %33 = arith.mulf %30, %14 : vector<2x32xf32>
    %34 = arith.mulf %29, %31 : vector<2x32xf32>
    %35 = arith.addf %33, %34 : vector<2x32xf32>
    %36 = math.tanh %35 : vector<2x32xf32>
    %37 = arith.mulf %32, %36 : vector<2x32xf32>
    %38 = arith.truncf %37 : vector<2x32xf32> to vector<2x32xbf16>
    %c0_19 = arith.constant 0 : index
    %c0_20 = arith.constant 0 : index
    %39 = vector.load %arg12[%c0_19, %c0_20] : memref<2x64xbf16, #tpu.memory_space<vmem>>, vector<2x32xbf16>
    tpu.vector_store %arg12[%c0_19, %c0_20], %38 {strides = array<i32>} : memref<2x64xbf16, #tpu.memory_space<vmem>>, vector<2x32xbf16>,
    %40 = arith.truncf %14 : vector<2x32xf32> to vector<2x32xbf16>
    %c0_21 = arith.constant 0 : index
    %c32 = arith.constant 32 : index
    %41 = vector.load %arg12[%c0_21, %c32] : memref<2x64xbf16, #tpu.memory_space<vmem>>, vector<2x32xbf16>
    tpu.vector_store %arg12[%c0_21, %c32], %40 {strides = array<i32>} : memref<2x64xbf16, #tpu.memory_space<vmem>>, vector<2x32xbf16>,
    %c0_22 = arith.constant 0 : index
    %c0_23 = arith.constant 0 : index
    %42 = vector.load %arg12[%c0_22, %c0_23] : memref<2x64xbf16, #tpu.memory_space<vmem>>, vector<2x64xbf16>
    %cst_24 = arith.constant dense<0.000000e+00> : vector<2x128xf32>
    %43 = tpu.matmul %42, %12, %cst_24 {dimension_numbers = #tpu.dot_dimension_numbers<[1], [0], [0], [1], [0, 0, 1, 1], [], []>} : vector<2x64xbf16>, vector<64x128xbf16>, vector<2x128xf32> -> vector<2x128xf32>
    %44 = vector.broadcast %13 : vector<1x128xf32> to vector<2x128xf32>
    %45 = arith.addf %43, %44 : vector<2x128xf32>
    %46 = arith.negf %45 : vector<2x128xf32>
    %47 = math.exp %46 : vector<2x128xf32>
    %cst_25 = arith.constant 1.000000e+00 : f32
    %48 = vector.broadcast %cst_25 : f32 to vector<2x128xf32>
    %49 = arith.addf %48, %47 : vector<2x128xf32>
    %50 = arith.divf %48, %49 : vector<2x128xf32>
    %51 = math.tanh %45 : vector<2x128xf32>
    %52 = vector.extract_strided_slice %50 {offsets = [0, 0], sizes = [2, 32], strides = [1, 1]} : vector<2x128xf32> to vector<2x32xf32>
    %53 = vector.extract_strided_slice %50 {offsets = [0, 32], sizes = [2, 32], strides = [1, 1]} : vector<2x128xf32> to vector<2x32xf32>
    %54 = vector.extract_strided_slice %51 {offsets = [0, 64], sizes = [2, 32], strides = [1, 1]} : vector<2x128xf32> to vector<2x32xf32>
    %55 = vector.extract_strided_slice %50 {offsets = [0, 96], sizes = [2, 32], strides = [1, 1]} : vector<2x128xf32> to vector<2x32xf32>
    %56 = arith.mulf %53, %14 : vector<2x32xf32>
    %57 = arith.mulf %52, %54 : vector<2x32xf32>
    %58 = arith.addf %56, %57 : vector<2x32xf32>
    %59 = math.tanh %58 : vector<2x32xf32>
    %60 = arith.mulf %55, %59 : vector<2x32xf32>
    %61 = vector.extract_strided_slice %9 {offsets = [2, 0], sizes = [2, 64], strides = [1, 1]} : vector<16x64xbf16> to vector<2x64xbf16>
    %c0_26 = arith.constant 0 : index
    %c0_27 = arith.constant 0 : index
    %62 = vector.load %arg11[%c0_26, %c0_27] : memref<2x96xbf16, #tpu.memory_space<vmem>>, vector<2x64xbf16>
    tpu.vector_store %arg11[%c0_26, %c0_27], %61 {strides = array<i32>} : memref<2x96xbf16, #tpu.memory_space<vmem>>, vector<2x64xbf16>,
    %63 = arith.truncf %37 : vector<2x32xf32> to vector<2x32xbf16>
    %c0_28 = arith.constant 0 : index
    %c64_29 = arith.constant 64 : index
    %64 = vector.load %arg11[%c0_28, %c64_29] : memref<2x96xbf16, #tpu.memory_space<vmem>>, vector<2x32xbf16>
    tpu.vector_store %arg11[%c0_28, %c64_29], %63 {strides = array<i32>} : memref<2x96xbf16, #tpu.memory_space<vmem>>, vector<2x32xbf16>,
    %c0_30 = arith.constant 0 : index
    %c0_31 = arith.constant 0 : index
    %65 = vector.load %arg11[%c0_30, %c0_31] : memref<2x96xbf16, #tpu.memory_space<vmem>>, vector<2x96xbf16>
    %cst_32 = arith.constant dense<0.000000e+00> : vector<2x128xf32>
    %66 = tpu.matmul %65, %10, %cst_32 {dimension_numbers = #tpu.dot_dimension_numbers<[1], [0], [0], [1], [0, 0, 1, 1], [], []>} : vector<2x96xbf16>, vector<96x128xbf16>, vector<2x128xf32> -> vector<2x128xf32>
    %67 = vector.broadcast %11 : vector<1x128xf32> to vector<2x128xf32>
    %68 = arith.addf %66, %67 : vector<2x128xf32>
    %69 = arith.negf %68 : vector<2x128xf32>
    %70 = math.exp %69 : vector<2x128xf32>
    %cst_33 = arith.constant 1.000000e+00 : f32
    %71 = vector.broadcast %cst_33 : f32 to vector<2x128xf32>
    %72 = arith.addf %71, %70 : vector<2x128xf32>
    %73 = arith.divf %71, %72 : vector<2x128xf32>
    %74 = math.tanh %68 : vector<2x128xf32>
    %75 = vector.extract_strided_slice %73 {offsets = [0, 0], sizes = [2, 32], strides = [1, 1]} : vector<2x128xf32> to vector<2x32xf32>
    %76 = vector.extract_strided_slice %73 {offsets = [0, 32], sizes = [2, 32], strides = [1, 1]} : vector<2x128xf32> to vector<2x32xf32>
    %77 = vector.extract_strided_slice %74 {offsets = [0, 64], sizes = [2, 32], strides = [1, 1]} : vector<2x128xf32> to vector<2x32xf32>
    %78 = vector.extract_strided_slice %73 {offsets = [0, 96], sizes = [2, 32], strides = [1, 1]} : vector<2x128xf32> to vector<2x32xf32>
    %79 = arith.mulf %76, %35 : vector<2x32xf32>
    %80 = arith.mulf %75, %77 : vector<2x32xf32>
    %81 = arith.addf %79, %80 : vector<2x32xf32>
    %82 = math.tanh %81 : vector<2x32xf32>
    %83 = arith.mulf %78, %82 : vector<2x32xf32>
    %84 = arith.truncf %83 : vector<2x32xf32> to vector<2x32xbf16>
    %c0_34 = arith.constant 0 : index
    %c0_35 = arith.constant 0 : index
    %85 = vector.load %arg12[%c0_34, %c0_35] : memref<2x64xbf16, #tpu.memory_space<vmem>>, vector<2x32xbf16>
    tpu.vector_store %arg12[%c0_34, %c0_35], %84 {strides = array<i32>} : memref<2x64xbf16, #tpu.memory_space<vmem>>, vector<2x32xbf16>,
    %86 = arith.truncf %60 : vector<2x32xf32> to vector<2x32xbf16>
    %c0_36 = arith.constant 0 : index
    %c32_37 = arith.constant 32 : index
    %87 = vector.load %arg12[%c0_36, %c32_37] : memref<2x64xbf16, #tpu.memory_space<vmem>>, vector<2x32xbf16>
    tpu.vector_store %arg12[%c0_36, %c32_37], %86 {strides = array<i32>} : memref<2x64xbf16, #tpu.memory_space<vmem>>, vector<2x32xbf16>,
    %c0_38 = arith.constant 0 : index
    %c0_39 = arith.constant 0 : index
    %88 = vector.load %arg12[%c0_38, %c0_39] : memref<2x64xbf16, #tpu.memory_space<vmem>>, vector<2x64xbf16>
    %cst_40 = arith.constant dense<0.000000e+00> : vector<2x128xf32>
    %89 = tpu.matmul %88, %12, %cst_40 {dimension_numbers = #tpu.dot_dimension_numbers<[1], [0], [0], [1], [0, 0, 1, 1], [], []>} : vector<2x64xbf16>, vector<64x128xbf16>, vector<2x128xf32> -> vector<2x128xf32>
    %90 = vector.broadcast %13 : vector<1x128xf32> to vector<2x128xf32>
    %91 = arith.addf %89, %90 : vector<2x128xf32>
    %92 = arith.negf %91 : vector<2x128xf32>
    %93 = math.exp %92 : vector<2x128xf32>
    %cst_41 = arith.constant 1.000000e+00 : f32
    %94 = vector.broadcast %cst_41 : f32 to vector<2x128xf32>
    %95 = arith.addf %94, %93 : vector<2x128xf32>
    %96 = arith.divf %94, %95 : vector<2x128xf32>
    %97 = math.tanh %91 : vector<2x128xf32>
    %98 = vector.extract_strided_slice %96 {offsets = [0, 0], sizes = [2, 32], strides = [1, 1]} : vector<2x128xf32> to vector<2x32xf32>
    %99 = vector.extract_strided_slice %96 {offsets = [0, 32], sizes = [2, 32], strides = [1, 1]} : vector<2x128xf32> to vector<2x32xf32>
    %100 = vector.extract_strided_slice %97 {offsets = [0, 64], sizes = [2, 32], strides = [1, 1]} : vector<2x128xf32> to vector<2x32xf32>
    %101 = vector.extract_strided_slice %96 {offsets = [0, 96], sizes = [2, 32], strides = [1, 1]} : vector<2x128xf32> to vector<2x32xf32>
    %102 = arith.mulf %99, %58 : vector<2x32xf32>
    %103 = arith.mulf %98, %100 : vector<2x32xf32>
    %104 = arith.addf %102, %103 : vector<2x32xf32>
    %105 = math.tanh %104 : vector<2x32xf32>
    %106 = arith.mulf %101, %105 : vector<2x32xf32>
    %107 = vector.extract_strided_slice %9 {offsets = [4, 0], sizes = [2, 64], strides = [1, 1]} : vector<16x64xbf16> to vector<2x64xbf16>
    %c0_42 = arith.constant 0 : index
    %c0_43 = arith.constant 0 : index
    %108 = vector.load %arg11[%c0_42, %c0_43] : memref<2x96xbf16, #tpu.memory_space<vmem>>, vector<2x64xbf16>
    tpu.vector_store %arg11[%c0_42, %c0_43], %107 {strides = array<i32>} : memref<2x96xbf16, #tpu.memory_space<vmem>>, vector<2x64xbf16>,
    %109 = arith.truncf %83 : vector<2x32xf32> to vector<2x32xbf16>
    %c0_44 = arith.constant 0 : index
    %c64_45 = arith.constant 64 : index
    %110 = vector.load %arg11[%c0_44, %c64_45] : memref<2x96xbf16, #tpu.memory_space<vmem>>, vector<2x32xbf16>
    tpu.vector_store %arg11[%c0_44, %c64_45], %109 {strides = array<i32>} : memref<2x96xbf16, #tpu.memory_space<vmem>>, vector<2x32xbf16>,
    %c0_46 = arith.constant 0 : index
    %c0_47 = arith.constant 0 : index
    %111 = vector.load %arg11[%c0_46, %c0_47] : memref<2x96xbf16, #tpu.memory_space<vmem>>, vector<2x96xbf16>
    %cst_48 = arith.constant dense<0.000000e+00> : vector<2x128xf32>
    %112 = tpu.matmul %111, %10, %cst_48 {dimension_numbers = #tpu.dot_dimension_numbers<[1], [0], [0], [1], [0, 0, 1, 1], [], []>} : vector<2x96xbf16>, vector<96x128xbf16>, vector<2x128xf32> -> vector<2x128xf32>
    %113 = vector.broadcast %11 : vector<1x128xf32> to vector<2x128xf32>
    %114 = arith.addf %112, %113 : vector<2x128xf32>
    %115 = arith.negf %114 : vector<2x128xf32>
    %116 = math.exp %115 : vector<2x128xf32>
    %cst_49 = arith.constant 1.000000e+00 : f32
    %117 = vector.broadcast %cst_49 : f32 to vector<2x128xf32>
    %118 = arith.addf %117, %116 : vector<2x128xf32>
    %119 = arith.divf %117, %118 : vector<2x128xf32>
    %120 = math.tanh %114 : vector<2x128xf32>
    %121 = vector.extract_strided_slice %119 {offsets = [0, 0], sizes = [2, 32], strides = [1, 1]} : vector<2x128xf32> to vector<2x32xf32>
    %122 = vector.extract_strided_slice %119 {offsets = [0, 32], sizes = [2, 32], strides = [1, 1]} : vector<2x128xf32> to vector<2x32xf32>
    %123 = vector.extract_strided_slice %120 {offsets = [0, 64], sizes = [2, 32], strides = [1, 1]} : vector<2x128xf32> to vector<2x32xf32>
    %124 = vector.extract_strided_slice %119 {offsets = [0, 96], sizes = [2, 32], strides = [1, 1]} : vector<2x128xf32> to vector<2x32xf32>
    %125 = arith.mulf %122, %81 : vector<2x32xf32>
    %126 = arith.mulf %121, %123 : vector<2x32xf32>
    %127 = arith.addf %125, %126 : vector<2x32xf32>
    %128 = math.tanh %127 : vector<2x32xf32>
    %129 = arith.mulf %124, %128 : vector<2x32xf32>
    %130 = arith.truncf %129 : vector<2x32xf32> to vector<2x32xbf16>
    %c0_50 = arith.constant 0 : index
    %c0_51 = arith.constant 0 : index
    %131 = vector.load %arg12[%c0_50, %c0_51] : memref<2x64xbf16, #tpu.memory_space<vmem>>, vector<2x32xbf16>
    tpu.vector_store %arg12[%c0_50, %c0_51], %130 {strides = array<i32>} : memref<2x64xbf16, #tpu.memory_space<vmem>>, vector<2x32xbf16>,
    %132 = arith.truncf %106 : vector<2x32xf32> to vector<2x32xbf16>
    %c0_52 = arith.constant 0 : index
    %c32_53 = arith.constant 32 : index
    %133 = vector.load %arg12[%c0_52, %c32_53] : memref<2x64xbf16, #tpu.memory_space<vmem>>, vector<2x32xbf16>
    tpu.vector_store %arg12[%c0_52, %c32_53], %132 {strides = array<i32>} : memref<2x64xbf16, #tpu.memory_space<vmem>>, vector<2x32xbf16>,
    %c0_54 = arith.constant 0 : index
    %c0_55 = arith.constant 0 : index
    %134 = vector.load %arg12[%c0_54, %c0_55] : memref<2x64xbf16, #tpu.memory_space<vmem>>, vector<2x64xbf16>
    %cst_56 = arith.constant dense<0.000000e+00> : vector<2x128xf32>
    %135 = tpu.matmul %134, %12, %cst_56 {dimension_numbers = #tpu.dot_dimension_numbers<[1], [0], [0], [1], [0, 0, 1, 1], [], []>} : vector<2x64xbf16>, vector<64x128xbf16>, vector<2x128xf32> -> vector<2x128xf32>
    %136 = vector.broadcast %13 : vector<1x128xf32> to vector<2x128xf32>
    %137 = arith.addf %135, %136 : vector<2x128xf32>
    %138 = arith.negf %137 : vector<2x128xf32>
    %139 = math.exp %138 : vector<2x128xf32>
    %cst_57 = arith.constant 1.000000e+00 : f32
    %140 = vector.broadcast %cst_57 : f32 to vector<2x128xf32>
    %141 = arith.addf %140, %139 : vector<2x128xf32>
    %142 = arith.divf %140, %141 : vector<2x128xf32>
    %143 = math.tanh %137 : vector<2x128xf32>
    %144 = vector.extract_strided_slice %142 {offsets = [0, 0], sizes = [2, 32], strides = [1, 1]} : vector<2x128xf32> to vector<2x32xf32>
    %145 = vector.extract_strided_slice %142 {offsets = [0, 32], sizes = [2, 32], strides = [1, 1]} : vector<2x128xf32> to vector<2x32xf32>
    %146 = vector.extract_strided_slice %143 {offsets = [0, 64], sizes = [2, 32], strides = [1, 1]} : vector<2x128xf32> to vector<2x32xf32>
    %147 = vector.extract_strided_slice %142 {offsets = [0, 96], sizes = [2, 32], strides = [1, 1]} : vector<2x128xf32> to vector<2x32xf32>
    %148 = arith.mulf %145, %104 : vector<2x32xf32>
    %149 = arith.mulf %144, %146 : vector<2x32xf32>
    %150 = arith.addf %148, %149 : vector<2x32xf32>
    %151 = math.tanh %150 : vector<2x32xf32>
    %152 = arith.mulf %147, %151 : vector<2x32xf32>
    %153 = vector.extract_strided_slice %9 {offsets = [6, 0], sizes = [2, 64], strides = [1, 1]} : vector<16x64xbf16> to vector<2x64xbf16>
    %c0_58 = arith.constant 0 : index
    %c0_59 = arith.constant 0 : index
    %154 = vector.load %arg11[%c0_58, %c0_59] : memref<2x96xbf16, #tpu.memory_space<vmem>>, vector<2x64xbf16>
    tpu.vector_store %arg11[%c0_58, %c0_59], %153 {strides = array<i32>} : memref<2x96xbf16, #tpu.memory_space<vmem>>, vector<2x64xbf16>,
    %155 = arith.truncf %129 : vector<2x32xf32> to vector<2x32xbf16>
    %c0_60 = arith.constant 0 : index
    %c64_61 = arith.constant 64 : index
    %156 = vector.load %arg11[%c0_60, %c64_61] : memref<2x96xbf16, #tpu.memory_space<vmem>>, vector<2x32xbf16>
    tpu.vector_store %arg11[%c0_60, %c64_61], %155 {strides = array<i32>} : memref<2x96xbf16, #tpu.memory_space<vmem>>, vector<2x32xbf16>,
    %c0_62 = arith.constant 0 : index
    %c0_63 = arith.constant 0 : index
    %157 = vector.load %arg11[%c0_62, %c0_63] : memref<2x96xbf16, #tpu.memory_space<vmem>>, vector<2x96xbf16>
    %cst_64 = arith.constant dense<0.000000e+00> : vector<2x128xf32>
    %158 = tpu.matmul %157, %10, %cst_64 {dimension_numbers = #tpu.dot_dimension_numbers<[1], [0], [0], [1], [0, 0, 1, 1], [], []>} : vector<2x96xbf16>, vector<96x128xbf16>, vector<2x128xf32> -> vector<2x128xf32>
    %159 = vector.broadcast %11 : vector<1x128xf32> to vector<2x128xf32>
    %160 = arith.addf %158, %159 : vector<2x128xf32>
    %161 = arith.negf %160 : vector<2x128xf32>
    %162 = math.exp %161 : vector<2x128xf32>
    %cst_65 = arith.constant 1.000000e+00 : f32
    %163 = vector.broadcast %cst_65 : f32 to vector<2x128xf32>
    %164 = arith.addf %163, %162 : vector<2x128xf32>
    %165 = arith.divf %163, %164 : vector<2x128xf32>
    %166 = math.tanh %160 : vector<2x128xf32>
    %167 = vector.extract_strided_slice %165 {offsets = [0, 0], sizes = [2, 32], strides = [1, 1]} : vector<2x128xf32> to vector<2x32xf32>
    %168 = vector.extract_strided_slice %165 {offsets = [0, 32], sizes = [2, 32], strides = [1, 1]} : vector<2x128xf32> to vector<2x32xf32>
    %169 = vector.extract_strided_slice %166 {offsets = [0, 64], sizes = [2, 32], strides = [1, 1]} : vector<2x128xf32> to vector<2x32xf32>
    %170 = vector.extract_strided_slice %165 {offsets = [0, 96], sizes = [2, 32], strides = [1, 1]} : vector<2x128xf32> to vector<2x32xf32>
    %171 = arith.mulf %168, %127 : vector<2x32xf32>
    %172 = arith.mulf %167, %169 : vector<2x32xf32>
    %173 = arith.addf %171, %172 : vector<2x32xf32>
    %174 = math.tanh %173 : vector<2x32xf32>
    %175 = arith.mulf %170, %174 : vector<2x32xf32>
    %176 = arith.truncf %175 : vector<2x32xf32> to vector<2x32xbf16>
    %c0_66 = arith.constant 0 : index
    %c0_67 = arith.constant 0 : index
    %177 = vector.load %arg12[%c0_66, %c0_67] : memref<2x64xbf16, #tpu.memory_space<vmem>>, vector<2x32xbf16>
    tpu.vector_store %arg12[%c0_66, %c0_67], %176 {strides = array<i32>} : memref<2x64xbf16, #tpu.memory_space<vmem>>, vector<2x32xbf16>,
    %178 = arith.truncf %152 : vector<2x32xf32> to vector<2x32xbf16>
    %c0_68 = arith.constant 0 : index
    %c32_69 = arith.constant 32 : index
    %179 = vector.load %arg12[%c0_68, %c32_69] : memref<2x64xbf16, #tpu.memory_space<vmem>>, vector<2x32xbf16>
    tpu.vector_store %arg12[%c0_68, %c32_69], %178 {strides = array<i32>} : memref<2x64xbf16, #tpu.memory_space<vmem>>, vector<2x32xbf16>,
    %c0_70 = arith.constant 0 : index
    %c0_71 = arith.constant 0 : index
    %180 = vector.load %arg12[%c0_70, %c0_71] : memref<2x64xbf16, #tpu.memory_space<vmem>>, vector<2x64xbf16>
    %cst_72 = arith.constant dense<0.000000e+00> : vector<2x128xf32>
    %181 = tpu.matmul %180, %12, %cst_72 {dimension_numbers = #tpu.dot_dimension_numbers<[1], [0], [0], [1], [0, 0, 1, 1], [], []>} : vector<2x64xbf16>, vector<64x128xbf16>, vector<2x128xf32> -> vector<2x128xf32>
    %182 = vector.broadcast %13 : vector<1x128xf32> to vector<2x128xf32>
    %183 = arith.addf %181, %182 : vector<2x128xf32>
    %184 = arith.negf %183 : vector<2x128xf32>
    %185 = math.exp %184 : vector<2x128xf32>
    %cst_73 = arith.constant 1.000000e+00 : f32
    %186 = vector.broadcast %cst_73 : f32 to vector<2x128xf32>
    %187 = arith.addf %186, %185 : vector<2x128xf32>
    %188 = arith.divf %186, %187 : vector<2x128xf32>
    %189 = math.tanh %183 : vector<2x128xf32>
    %190 = vector.extract_strided_slice %188 {offsets = [0, 0], sizes = [2, 32], strides = [1, 1]} : vector<2x128xf32> to vector<2x32xf32>
    %191 = vector.extract_strided_slice %188 {offsets = [0, 32], sizes = [2, 32], strides = [1, 1]} : vector<2x128xf32> to vector<2x32xf32>
    %192 = vector.extract_strided_slice %189 {offsets = [0, 64], sizes = [2, 32], strides = [1, 1]} : vector<2x128xf32> to vector<2x32xf32>
    %193 = vector.extract_strided_slice %188 {offsets = [0, 96], sizes = [2, 32], strides = [1, 1]} : vector<2x128xf32> to vector<2x32xf32>
    %194 = arith.mulf %191, %150 : vector<2x32xf32>
    %195 = arith.mulf %190, %192 : vector<2x32xf32>
    %196 = arith.addf %194, %195 : vector<2x32xf32>
    %197 = math.tanh %196 : vector<2x32xf32>
    %198 = arith.mulf %193, %197 : vector<2x32xf32>
    %199 = vector.extract_strided_slice %9 {offsets = [8, 0], sizes = [2, 64], strides = [1, 1]} : vector<16x64xbf16> to vector<2x64xbf16>
    %c0_74 = arith.constant 0 : index
    %c0_75 = arith.constant 0 : index
    %200 = vector.load %arg11[%c0_74, %c0_75] : memref<2x96xbf16, #tpu.memory_space<vmem>>, vector<2x64xbf16>
    tpu.vector_store %arg11[%c0_74, %c0_75], %199 {strides = array<i32>} : memref<2x96xbf16, #tpu.memory_space<vmem>>, vector<2x64xbf16>,
    %201 = arith.truncf %175 : vector<2x32xf32> to vector<2x32xbf16>
    %c0_76 = arith.constant 0 : index
    %c64_77 = arith.constant 64 : index
    %202 = vector.load %arg11[%c0_76, %c64_77] : memref<2x96xbf16, #tpu.memory_space<vmem>>, vector<2x32xbf16>
    tpu.vector_store %arg11[%c0_76, %c64_77], %201 {strides = array<i32>} : memref<2x96xbf16, #tpu.memory_space<vmem>>, vector<2x32xbf16>,
    %c0_78 = arith.constant 0 : index
    %c0_79 = arith.constant 0 : index
    %203 = vector.load %arg11[%c0_78, %c0_79] : memref<2x96xbf16, #tpu.memory_space<vmem>>, vector<2x96xbf16>
    %cst_80 = arith.constant dense<0.000000e+00> : vector<2x128xf32>
    %204 = tpu.matmul %203, %10, %cst_80 {dimension_numbers = #tpu.dot_dimension_numbers<[1], [0], [0], [1], [0, 0, 1, 1], [], []>} : vector<2x96xbf16>, vector<96x128xbf16>, vector<2x128xf32> -> vector<2x128xf32>
    %205 = vector.broadcast %11 : vector<1x128xf32> to vector<2x128xf32>
    %206 = arith.addf %204, %205 : vector<2x128xf32>
    %207 = arith.negf %206 : vector<2x128xf32>
    %208 = math.exp %207 : vector<2x128xf32>
    %cst_81 = arith.constant 1.000000e+00 : f32
    %209 = vector.broadcast %cst_81 : f32 to vector<2x128xf32>
    %210 = arith.addf %209, %208 : vector<2x128xf32>
    %211 = arith.divf %209, %210 : vector<2x128xf32>
    %212 = math.tanh %206 : vector<2x128xf32>
    %213 = vector.extract_strided_slice %211 {offsets = [0, 0], sizes = [2, 32], strides = [1, 1]} : vector<2x128xf32> to vector<2x32xf32>
    %214 = vector.extract_strided_slice %211 {offsets = [0, 32], sizes = [2, 32], strides = [1, 1]} : vector<2x128xf32> to vector<2x32xf32>
    %215 = vector.extract_strided_slice %212 {offsets = [0, 64], sizes = [2, 32], strides = [1, 1]} : vector<2x128xf32> to vector<2x32xf32>
    %216 = vector.extract_strided_slice %211 {offsets = [0, 96], sizes = [2, 32], strides = [1, 1]} : vector<2x128xf32> to vector<2x32xf32>
    %217 = arith.mulf %214, %173 : vector<2x32xf32>
    %218 = arith.mulf %213, %215 : vector<2x32xf32>
    %219 = arith.addf %217, %218 : vector<2x32xf32>
    %220 = math.tanh %219 : vector<2x32xf32>
    %221 = arith.mulf %216, %220 : vector<2x32xf32>
    %222 = arith.truncf %221 : vector<2x32xf32> to vector<2x32xbf16>
    %c0_82 = arith.constant 0 : index
    %c0_83 = arith.constant 0 : index
    %223 = vector.load %arg12[%c0_82, %c0_83] : memref<2x64xbf16, #tpu.memory_space<vmem>>, vector<2x32xbf16>
    tpu.vector_store %arg12[%c0_82, %c0_83], %222 {strides = array<i32>} : memref<2x64xbf16, #tpu.memory_space<vmem>>, vector<2x32xbf16>,
    %224 = arith.truncf %198 : vector<2x32xf32> to vector<2x32xbf16>
    %c0_84 = arith.constant 0 : index
    %c32_85 = arith.constant 32 : index
    %225 = vector.load %arg12[%c0_84, %c32_85] : memref<2x64xbf16, #tpu.memory_space<vmem>>, vector<2x32xbf16>
    tpu.vector_store %arg12[%c0_84, %c32_85], %224 {strides = array<i32>} : memref<2x64xbf16, #tpu.memory_space<vmem>>, vector<2x32xbf16>,
    %c0_86 = arith.constant 0 : index
    %c0_87 = arith.constant 0 : index
    %226 = vector.load %arg12[%c0_86, %c0_87] : memref<2x64xbf16, #tpu.memory_space<vmem>>, vector<2x64xbf16>
    %cst_88 = arith.constant dense<0.000000e+00> : vector<2x128xf32>
    %227 = tpu.matmul %226, %12, %cst_88 {dimension_numbers = #tpu.dot_dimension_numbers<[1], [0], [0], [1], [0, 0, 1, 1], [], []>} : vector<2x64xbf16>, vector<64x128xbf16>, vector<2x128xf32> -> vector<2x128xf32>
    %228 = vector.broadcast %13 : vector<1x128xf32> to vector<2x128xf32>
    %229 = arith.addf %227, %228 : vector<2x128xf32>
    %230 = arith.negf %229 : vector<2x128xf32>
    %231 = math.exp %230 : vector<2x128xf32>
    %cst_89 = arith.constant 1.000000e+00 : f32
    %232 = vector.broadcast %cst_89 : f32 to vector<2x128xf32>
    %233 = arith.addf %232, %231 : vector<2x128xf32>
    %234 = arith.divf %232, %233 : vector<2x128xf32>
    %235 = math.tanh %229 : vector<2x128xf32>
    %236 = vector.extract_strided_slice %234 {offsets = [0, 0], sizes = [2, 32], strides = [1, 1]} : vector<2x128xf32> to vector<2x32xf32>
    %237 = vector.extract_strided_slice %234 {offsets = [0, 32], sizes = [2, 32], strides = [1, 1]} : vector<2x128xf32> to vector<2x32xf32>
    %238 = vector.extract_strided_slice %235 {offsets = [0, 64], sizes = [2, 32], strides = [1, 1]} : vector<2x128xf32> to vector<2x32xf32>
    %239 = vector.extract_strided_slice %234 {offsets = [0, 96], sizes = [2, 32], strides = [1, 1]} : vector<2x128xf32> to vector<2x32xf32>
    %240 = arith.mulf %237, %196 : vector<2x32xf32>
    %241 = arith.mulf %236, %238 : vector<2x32xf32>
    %242 = arith.addf %240, %241 : vector<2x32xf32>
    %243 = math.tanh %242 : vector<2x32xf32>
    %244 = arith.mulf %239, %243 : vector<2x32xf32>
    %245 = vector.extract_strided_slice %9 {offsets = [10, 0], sizes = [2, 64], strides = [1, 1]} : vector<16x64xbf16> to vector<2x64xbf16>
    %c0_90 = arith.constant 0 : index
    %c0_91 = arith.constant 0 : index
    %246 = vector.load %arg11[%c0_90, %c0_91] : memref<2x96xbf16, #tpu.memory_space<vmem>>, vector<2x64xbf16>
    tpu.vector_store %arg11[%c0_90, %c0_91], %245 {strides = array<i32>} : memref<2x96xbf16, #tpu.memory_space<vmem>>, vector<2x64xbf16>,
    %247 = arith.truncf %221 : vector<2x32xf32> to vector<2x32xbf16>
    %c0_92 = arith.constant 0 : index
    %c64_93 = arith.constant 64 : index
    %248 = vector.load %arg11[%c0_92, %c64_93] : memref<2x96xbf16, #tpu.memory_space<vmem>>, vector<2x32xbf16>
    tpu.vector_store %arg11[%c0_92, %c64_93], %247 {strides = array<i32>} : memref<2x96xbf16, #tpu.memory_space<vmem>>, vector<2x32xbf16>,
    %c0_94 = arith.constant 0 : index
    %c0_95 = arith.constant 0 : index
    %249 = vector.load %arg11[%c0_94, %c0_95] : memref<2x96xbf16, #tpu.memory_space<vmem>>, vector<2x96xbf16>
    %cst_96 = arith.constant dense<0.000000e+00> : vector<2x128xf32>
    %250 = tpu.matmul %249, %10, %cst_96 {dimension_numbers = #tpu.dot_dimension_numbers<[1], [0], [0], [1], [0, 0, 1, 1], [], []>} : vector<2x96xbf16>, vector<96x128xbf16>, vector<2x128xf32> -> vector<2x128xf32>
    %251 = vector.broadcast %11 : vector<1x128xf32> to vector<2x128xf32>
    %252 = arith.addf %250, %251 : vector<2x128xf32>
    %253 = arith.negf %252 : vector<2x128xf32>
    %254 = math.exp %253 : vector<2x128xf32>
    %cst_97 = arith.constant 1.000000e+00 : f32
    %255 = vector.broadcast %cst_97 : f32 to vector<2x128xf32>
    %256 = arith.addf %255, %254 : vector<2x128xf32>
    %257 = arith.divf %255, %256 : vector<2x128xf32>
    %258 = math.tanh %252 : vector<2x128xf32>
    %259 = vector.extract_strided_slice %257 {offsets = [0, 0], sizes = [2, 32], strides = [1, 1]} : vector<2x128xf32> to vector<2x32xf32>
    %260 = vector.extract_strided_slice %257 {offsets = [0, 32], sizes = [2, 32], strides = [1, 1]} : vector<2x128xf32> to vector<2x32xf32>
    %261 = vector.extract_strided_slice %258 {offsets = [0, 64], sizes = [2, 32], strides = [1, 1]} : vector<2x128xf32> to vector<2x32xf32>
    %262 = vector.extract_strided_slice %257 {offsets = [0, 96], sizes = [2, 32], strides = [1, 1]} : vector<2x128xf32> to vector<2x32xf32>
    %263 = arith.mulf %260, %219 : vector<2x32xf32>
    %264 = arith.mulf %259, %261 : vector<2x32xf32>
    %265 = arith.addf %263, %264 : vector<2x32xf32>
    %266 = math.tanh %265 : vector<2x32xf32>
    %267 = arith.mulf %262, %266 : vector<2x32xf32>
    %268 = arith.truncf %267 : vector<2x32xf32> to vector<2x32xbf16>
    %c0_98 = arith.constant 0 : index
    %c0_99 = arith.constant 0 : index
    %269 = vector.load %arg12[%c0_98, %c0_99] : memref<2x64xbf16, #tpu.memory_space<vmem>>, vector<2x32xbf16>
    tpu.vector_store %arg12[%c0_98, %c0_99], %268 {strides = array<i32>} : memref<2x64xbf16, #tpu.memory_space<vmem>>, vector<2x32xbf16>,
    %270 = arith.truncf %244 : vector<2x32xf32> to vector<2x32xbf16>
    %c0_100 = arith.constant 0 : index
    %c32_101 = arith.constant 32 : index
    %271 = vector.load %arg12[%c0_100, %c32_101] : memref<2x64xbf16, #tpu.memory_space<vmem>>, vector<2x32xbf16>
    tpu.vector_store %arg12[%c0_100, %c32_101], %270 {strides = array<i32>} : memref<2x64xbf16, #tpu.memory_space<vmem>>, vector<2x32xbf16>,
    %c0_102 = arith.constant 0 : index
    %c0_103 = arith.constant 0 : index
    %272 = vector.load %arg12[%c0_102, %c0_103] : memref<2x64xbf16, #tpu.memory_space<vmem>>, vector<2x64xbf16>
    %cst_104 = arith.constant dense<0.000000e+00> : vector<2x128xf32>
    %273 = tpu.matmul %272, %12, %cst_104 {dimension_numbers = #tpu.dot_dimension_numbers<[1], [0], [0], [1], [0, 0, 1, 1], [], []>} : vector<2x64xbf16>, vector<64x128xbf16>, vector<2x128xf32> -> vector<2x128xf32>
    %274 = vector.broadcast %13 : vector<1x128xf32> to vector<2x128xf32>
    %275 = arith.addf %273, %274 : vector<2x128xf32>
    %276 = arith.negf %275 : vector<2x128xf32>
    %277 = math.exp %276 : vector<2x128xf32>
    %cst_105 = arith.constant 1.000000e+00 : f32
    %278 = vector.broadcast %cst_105 : f32 to vector<2x128xf32>
    %279 = arith.addf %278, %277 : vector<2x128xf32>
    %280 = arith.divf %278, %279 : vector<2x128xf32>
    %281 = math.tanh %275 : vector<2x128xf32>
    %282 = vector.extract_strided_slice %280 {offsets = [0, 0], sizes = [2, 32], strides = [1, 1]} : vector<2x128xf32> to vector<2x32xf32>
    %283 = vector.extract_strided_slice %280 {offsets = [0, 32], sizes = [2, 32], strides = [1, 1]} : vector<2x128xf32> to vector<2x32xf32>
    %284 = vector.extract_strided_slice %281 {offsets = [0, 64], sizes = [2, 32], strides = [1, 1]} : vector<2x128xf32> to vector<2x32xf32>
    %285 = vector.extract_strided_slice %280 {offsets = [0, 96], sizes = [2, 32], strides = [1, 1]} : vector<2x128xf32> to vector<2x32xf32>
    %286 = arith.mulf %283, %242 : vector<2x32xf32>
    %287 = arith.mulf %282, %284 : vector<2x32xf32>
    %288 = arith.addf %286, %287 : vector<2x32xf32>
    %289 = math.tanh %288 : vector<2x32xf32>
    %290 = arith.mulf %285, %289 : vector<2x32xf32>
    %291 = vector.extract_strided_slice %9 {offsets = [12, 0], sizes = [2, 64], strides = [1, 1]} : vector<16x64xbf16> to vector<2x64xbf16>
    %c0_106 = arith.constant 0 : index
    %c0_107 = arith.constant 0 : index
    %292 = vector.load %arg11[%c0_106, %c0_107] : memref<2x96xbf16, #tpu.memory_space<vmem>>, vector<2x64xbf16>
    tpu.vector_store %arg11[%c0_106, %c0_107], %291 {strides = array<i32>} : memref<2x96xbf16, #tpu.memory_space<vmem>>, vector<2x64xbf16>,
    %293 = arith.truncf %267 : vector<2x32xf32> to vector<2x32xbf16>
    %c0_108 = arith.constant 0 : index
    %c64_109 = arith.constant 64 : index
    %294 = vector.load %arg11[%c0_108, %c64_109] : memref<2x96xbf16, #tpu.memory_space<vmem>>, vector<2x32xbf16>
    tpu.vector_store %arg11[%c0_108, %c64_109], %293 {strides = array<i32>} : memref<2x96xbf16, #tpu.memory_space<vmem>>, vector<2x32xbf16>,
    %c0_110 = arith.constant 0 : index
    %c0_111 = arith.constant 0 : index
    %295 = vector.load %arg11[%c0_110, %c0_111] : memref<2x96xbf16, #tpu.memory_space<vmem>>, vector<2x96xbf16>
    %cst_112 = arith.constant dense<0.000000e+00> : vector<2x128xf32>
    %296 = tpu.matmul %295, %10, %cst_112 {dimension_numbers = #tpu.dot_dimension_numbers<[1], [0], [0], [1], [0, 0, 1, 1], [], []>} : vector<2x96xbf16>, vector<96x128xbf16>, vector<2x128xf32> -> vector<2x128xf32>
    %297 = vector.broadcast %11 : vector<1x128xf32> to vector<2x128xf32>
    %298 = arith.addf %296, %297 : vector<2x128xf32>
    %299 = arith.negf %298 : vector<2x128xf32>
    %300 = math.exp %299 : vector<2x128xf32>
    %cst_113 = arith.constant 1.000000e+00 : f32
    %301 = vector.broadcast %cst_113 : f32 to vector<2x128xf32>
    %302 = arith.addf %301, %300 : vector<2x128xf32>
    %303 = arith.divf %301, %302 : vector<2x128xf32>
    %304 = math.tanh %298 : vector<2x128xf32>
    %305 = vector.extract_strided_slice %303 {offsets = [0, 0], sizes = [2, 32], strides = [1, 1]} : vector<2x128xf32> to vector<2x32xf32>
    %306 = vector.extract_strided_slice %303 {offsets = [0, 32], sizes = [2, 32], strides = [1, 1]} : vector<2x128xf32> to vector<2x32xf32>
    %307 = vector.extract_strided_slice %304 {offsets = [0, 64], sizes = [2, 32], strides = [1, 1]} : vector<2x128xf32> to vector<2x32xf32>
    %308 = vector.extract_strided_slice %303 {offsets = [0, 96], sizes = [2, 32], strides = [1, 1]} : vector<2x128xf32> to vector<2x32xf32>
    %309 = arith.mulf %306, %265 : vector<2x32xf32>
    %310 = arith.mulf %305, %307 : vector<2x32xf32>
    %311 = arith.addf %309, %310 : vector<2x32xf32>
    %312 = math.tanh %311 : vector<2x32xf32>
    %313 = arith.mulf %308, %312 : vector<2x32xf32>
    %314 = arith.truncf %313 : vector<2x32xf32> to vector<2x32xbf16>
    %c0_114 = arith.constant 0 : index
    %c0_115 = arith.constant 0 : index
    %315 = vector.load %arg12[%c0_114, %c0_115] : memref<2x64xbf16, #tpu.memory_space<vmem>>, vector<2x32xbf16>
    tpu.vector_store %arg12[%c0_114, %c0_115], %314 {strides = array<i32>} : memref<2x64xbf16, #tpu.memory_space<vmem>>, vector<2x32xbf16>,
    %316 = arith.truncf %290 : vector<2x32xf32> to vector<2x32xbf16>
    %c0_116 = arith.constant 0 : index
    %c32_117 = arith.constant 32 : index
    %317 = vector.load %arg12[%c0_116, %c32_117] : memref<2x64xbf16, #tpu.memory_space<vmem>>, vector<2x32xbf16>
    tpu.vector_store %arg12[%c0_116, %c32_117], %316 {strides = array<i32>} : memref<2x64xbf16, #tpu.memory_space<vmem>>, vector<2x32xbf16>,
    %c0_118 = arith.constant 0 : index
    %c0_119 = arith.constant 0 : index
    %318 = vector.load %arg12[%c0_118, %c0_119] : memref<2x64xbf16, #tpu.memory_space<vmem>>, vector<2x64xbf16>
    %cst_120 = arith.constant dense<0.000000e+00> : vector<2x128xf32>
    %319 = tpu.matmul %318, %12, %cst_120 {dimension_numbers = #tpu.dot_dimension_numbers<[1], [0], [0], [1], [0, 0, 1, 1], [], []>} : vector<2x64xbf16>, vector<64x128xbf16>, vector<2x128xf32> -> vector<2x128xf32>
    %320 = vector.broadcast %13 : vector<1x128xf32> to vector<2x128xf32>
    %321 = arith.addf %319, %320 : vector<2x128xf32>
    %322 = arith.negf %321 : vector<2x128xf32>
    %323 = math.exp %322 : vector<2x128xf32>
    %cst_121 = arith.constant 1.000000e+00 : f32
    %324 = vector.broadcast %cst_121 : f32 to vector<2x128xf32>
    %325 = arith.addf %324, %323 : vector<2x128xf32>
    %326 = arith.divf %324, %325 : vector<2x128xf32>
    %327 = math.tanh %321 : vector<2x128xf32>
    %328 = vector.extract_strided_slice %326 {offsets = [0, 0], sizes = [2, 32], strides = [1, 1]} : vector<2x128xf32> to vector<2x32xf32>
    %329 = vector.extract_strided_slice %326 {offsets = [0, 32], sizes = [2, 32], strides = [1, 1]} : vector<2x128xf32> to vector<2x32xf32>
    %330 = vector.extract_strided_slice %327 {offsets = [0, 64], sizes = [2, 32], strides = [1, 1]} : vector<2x128xf32> to vector<2x32xf32>
    %331 = vector.extract_strided_slice %326 {offsets = [0, 96], sizes = [2, 32], strides = [1, 1]} : vector<2x128xf32> to vector<2x32xf32>
    %332 = arith.mulf %329, %288 : vector<2x32xf32>
    %333 = arith.mulf %328, %330 : vector<2x32xf32>
    %334 = arith.addf %332, %333 : vector<2x32xf32>
    %335 = math.tanh %334 : vector<2x32xf32>
    %336 = arith.mulf %331, %335 : vector<2x32xf32>
    %337 = vector.extract_strided_slice %9 {offsets = [14, 0], sizes = [2, 64], strides = [1, 1]} : vector<16x64xbf16> to vector<2x64xbf16>
    %c0_122 = arith.constant 0 : index
    %c0_123 = arith.constant 0 : index
    %338 = vector.load %arg11[%c0_122, %c0_123] : memref<2x96xbf16, #tpu.memory_space<vmem>>, vector<2x64xbf16>
    tpu.vector_store %arg11[%c0_122, %c0_123], %337 {strides = array<i32>} : memref<2x96xbf16, #tpu.memory_space<vmem>>, vector<2x64xbf16>,
    %339 = arith.truncf %313 : vector<2x32xf32> to vector<2x32xbf16>
    %c0_124 = arith.constant 0 : index
    %c64_125 = arith.constant 64 : index
    %340 = vector.load %arg11[%c0_124, %c64_125] : memref<2x96xbf16, #tpu.memory_space<vmem>>, vector<2x32xbf16>
    tpu.vector_store %arg11[%c0_124, %c64_125], %339 {strides = array<i32>} : memref<2x96xbf16, #tpu.memory_space<vmem>>, vector<2x32xbf16>,
    %c0_126 = arith.constant 0 : index
    %c0_127 = arith.constant 0 : index
    %341 = vector.load %arg11[%c0_126, %c0_127] : memref<2x96xbf16, #tpu.memory_space<vmem>>, vector<2x96xbf16>
    %cst_128 = arith.constant dense<0.000000e+00> : vector<2x128xf32>
    %342 = tpu.matmul %341, %10, %cst_128 {dimension_numbers = #tpu.dot_dimension_numbers<[1], [0], [0], [1], [0, 0, 1, 1], [], []>} : vector<2x96xbf16>, vector<96x128xbf16>, vector<2x128xf32> -> vector<2x128xf32>
    %343 = vector.broadcast %11 : vector<1x128xf32> to vector<2x128xf32>
    %344 = arith.addf %342, %343 : vector<2x128xf32>
    %345 = arith.negf %344 : vector<2x128xf32>
    %346 = math.exp %345 : vector<2x128xf32>
    %cst_129 = arith.constant 1.000000e+00 : f32
    %347 = vector.broadcast %cst_129 : f32 to vector<2x128xf32>
    %348 = arith.addf %347, %346 : vector<2x128xf32>
    %349 = arith.divf %347, %348 : vector<2x128xf32>
    %350 = math.tanh %344 : vector<2x128xf32>
    %351 = vector.extract_strided_slice %349 {offsets = [0, 0], sizes = [2, 32], strides = [1, 1]} : vector<2x128xf32> to vector<2x32xf32>
    %352 = vector.extract_strided_slice %349 {offsets = [0, 32], sizes = [2, 32], strides = [1, 1]} : vector<2x128xf32> to vector<2x32xf32>
    %353 = vector.extract_strided_slice %350 {offsets = [0, 64], sizes = [2, 32], strides = [1, 1]} : vector<2x128xf32> to vector<2x32xf32>
    %354 = vector.extract_strided_slice %349 {offsets = [0, 96], sizes = [2, 32], strides = [1, 1]} : vector<2x128xf32> to vector<2x32xf32>
    %355 = arith.mulf %352, %311 : vector<2x32xf32>
    %356 = arith.mulf %351, %353 : vector<2x32xf32>
    %357 = arith.addf %355, %356 : vector<2x32xf32>
    %358 = math.tanh %357 : vector<2x32xf32>
    %359 = arith.mulf %354, %358 : vector<2x32xf32>
    %360 = arith.truncf %359 : vector<2x32xf32> to vector<2x32xbf16>
    %c0_130 = arith.constant 0 : index
    %c0_131 = arith.constant 0 : index
    %361 = vector.load %arg12[%c0_130, %c0_131] : memref<2x64xbf16, #tpu.memory_space<vmem>>, vector<2x32xbf16>
    tpu.vector_store %arg12[%c0_130, %c0_131], %360 {strides = array<i32>} : memref<2x64xbf16, #tpu.memory_space<vmem>>, vector<2x32xbf16>,
    %362 = arith.truncf %336 : vector<2x32xf32> to vector<2x32xbf16>
    %c0_132 = arith.constant 0 : index
    %c32_133 = arith.constant 32 : index
    %363 = vector.load %arg12[%c0_132, %c32_133] : memref<2x64xbf16, #tpu.memory_space<vmem>>, vector<2x32xbf16>
    tpu.vector_store %arg12[%c0_132, %c32_133], %362 {strides = array<i32>} : memref<2x64xbf16, #tpu.memory_space<vmem>>, vector<2x32xbf16>,
    %c0_134 = arith.constant 0 : index
    %c0_135 = arith.constant 0 : index
    %364 = vector.load %arg12[%c0_134, %c0_135] : memref<2x64xbf16, #tpu.memory_space<vmem>>, vector<2x64xbf16>
    %cst_136 = arith.constant dense<0.000000e+00> : vector<2x128xf32>
    %365 = tpu.matmul %364, %12, %cst_136 {dimension_numbers = #tpu.dot_dimension_numbers<[1], [0], [0], [1], [0, 0, 1, 1], [], []>} : vector<2x64xbf16>, vector<64x128xbf16>, vector<2x128xf32> -> vector<2x128xf32>
    %366 = vector.broadcast %13 : vector<1x128xf32> to vector<2x128xf32>
    %367 = arith.addf %365, %366 : vector<2x128xf32>
    %368 = arith.negf %367 : vector<2x128xf32>
    %369 = math.exp %368 : vector<2x128xf32>
    %cst_137 = arith.constant 1.000000e+00 : f32
    %370 = vector.broadcast %cst_137 : f32 to vector<2x128xf32>
    %371 = arith.addf %370, %369 : vector<2x128xf32>
    %372 = arith.divf %370, %371 : vector<2x128xf32>
    %373 = math.tanh %367 : vector<2x128xf32>
    %374 = vector.extract_strided_slice %372 {offsets = [0, 0], sizes = [2, 32], strides = [1, 1]} : vector<2x128xf32> to vector<2x32xf32>
    %375 = vector.extract_strided_slice %372 {offsets = [0, 32], sizes = [2, 32], strides = [1, 1]} : vector<2x128xf32> to vector<2x32xf32>
    %376 = vector.extract_strided_slice %373 {offsets = [0, 64], sizes = [2, 32], strides = [1, 1]} : vector<2x128xf32> to vector<2x32xf32>
    %377 = vector.extract_strided_slice %372 {offsets = [0, 96], sizes = [2, 32], strides = [1, 1]} : vector<2x128xf32> to vector<2x32xf32>
    %378 = arith.mulf %375, %334 : vector<2x32xf32>
    %379 = arith.mulf %374, %376 : vector<2x32xf32>
    %380 = arith.addf %378, %379 : vector<2x32xf32>
    %381 = math.tanh %380 : vector<2x32xf32>
    %382 = arith.mulf %377, %381 : vector<2x32xf32>
    %383 = arith.truncf %382 : vector<2x32xf32> to vector<2x32xbf16>
    %c0_138 = arith.constant 0 : index
    %c0_139 = arith.constant 0 : index
    %384 = vector.load %arg6[%c0_138, %c0_139] : memref<32x1xbf16, #tpu.memory_space<vmem>>, vector<32x1xbf16>
    %cst_140 = arith.constant dense<0.000000e+00> : vector<2x1xf32>
    %385 = tpu.matmul %383, %384, %cst_140 {dimension_numbers = #tpu.dot_dimension_numbers<[1], [0], [0], [1], [0, 0, 1, 1], [], []>} : vector<2x32xbf16>, vector<32x1xbf16>, vector<2x1xf32> -> vector<2x1xf32>
    %c0_141 = arith.constant 0 : index
    %c0_142 = arith.constant 0 : index
    %386 = vector.load %arg7[%c0_141, %c0_142] : memref<1x1xf32, #tpu.memory_space<vmem>>, vector<1x1xf32>
    %387 = vector.broadcast %386 : vector<1x1xf32> to vector<2x1xf32>
    %388 = arith.addf %385, %387 : vector<2x1xf32>
    %389 = arith.negf %388 : vector<2x1xf32>
    %390 = math.exp %389 : vector<2x1xf32>
    %cst_143 = arith.constant 1.000000e+00 : f32
    %391 = vector.broadcast %cst_143 : f32 to vector<2x1xf32>
    %392 = arith.addf %391, %390 : vector<2x1xf32>
    %393 = arith.divf %391, %392 : vector<2x1xf32>
    %c0_144 = arith.constant 0 : index
    %c0_145 = arith.constant 0 : index
    %394 = vector.load %arg8[%c0_144, %c0_145] : memref<2x1xf32, #tpu.memory_space<vmem>>, vector<2x1xf32>
    tpu.vector_store %arg8[%c0_144, %c0_145], %393 {strides = array<i32>} : memref<2x1xf32, #tpu.memory_space<vmem>>, vector<2x1xf32>,
    %c0_146 = arith.constant 0 : index
    %c0_147 = arith.constant 0 : index
    %c0_148 = arith.constant 0 : index
    %395 = vector.load %arg9[%c0_146, %c0_147, %c0_148] : memref<2x2x32xf32, #tpu.memory_space<vmem>>, vector<1x2x32xf32>
    %396 = vector.shape_cast %395 : vector<1x2x32xf32> to vector<2x32xf32>
    %397 = vector.shape_cast %359 : vector<2x32xf32> to vector<1x2x32xf32>
    tpu.vector_store %arg9[%c0_146, %c0_147, %c0_148], %397 {strides = array<i32>} : memref<2x2x32xf32, #tpu.memory_space<vmem>>, vector<1x2x32xf32>,
    %c1 = arith.constant 1 : index
    %c0_149 = arith.constant 0 : index
    %c0_150 = arith.constant 0 : index
    %398 = vector.load %arg9[%c1, %c0_149, %c0_150] : memref<2x2x32xf32, #tpu.memory_space<vmem>>, vector<1x2x32xf32>
    %399 = vector.shape_cast %398 : vector<1x2x32xf32> to vector<2x32xf32>
    %400 = vector.shape_cast %382 : vector<2x32xf32> to vector<1x2x32xf32>
    tpu.vector_store %arg9[%c1, %c0_149, %c0_150], %400 {strides = array<i32>} : memref<2x2x32xf32, #tpu.memory_space<vmem>>, vector<1x2x32xf32>,
    %c0_151 = arith.constant 0 : index
    %c0_152 = arith.constant 0 : index
    %c0_153 = arith.constant 0 : index
    %401 = vector.load %arg10[%c0_151, %c0_152, %c0_153] : memref<2x2x32xf32, #tpu.memory_space<vmem>>, vector<1x2x32xf32>
    %402 = vector.shape_cast %401 : vector<1x2x32xf32> to vector<2x32xf32>
    %403 = vector.shape_cast %357 : vector<2x32xf32> to vector<1x2x32xf32>
    tpu.vector_store %arg10[%c0_151, %c0_152, %c0_153], %403 {strides = array<i32>} : memref<2x2x32xf32, #tpu.memory_space<vmem>>, vector<1x2x32xf32>,
    %c1_154 = arith.constant 1 : index
    %c0_155 = arith.constant 0 : index
    %c0_156 = arith.constant 0 : index
    %404 = vector.load %arg10[%c1_154, %c0_155, %c0_156] : memref<2x2x32xf32, #tpu.memory_space<vmem>>, vector<1x2x32xf32>
    %405 = vector.shape_cast %404 : vector<1x2x32xf32> to vector<2x32xf32>
    %406 = vector.shape_cast %380 : vector<2x32xf32> to vector<1x2x32xf32>
    tpu.vector_store %arg10[%c1_154, %c0_155, %c0_156], %406 {strides = array<i32>} : memref<2x2x32xf32, #tpu.memory_space<vmem>>, vector<1x2x32xf32>,
    return
  }
}

</mosaic_0001>

<bundles_post_ra>
// kernel: sentiment_forward.1
= control target key start
LH: loop header
LB: loop body
LE: loop exit
PB: predicated region body
PF: predicated region fallthrough
CT: control target
= control target key end

     0   :  { %s2265_s0 = inlined_call_operand.vmem [shape: s32[16,1], index: 0, kind: input, shape index: {}]   ;;  %s2266_s1 = inlined_call_operand.vmem [shape: bf16[100,64], index: 1, kind: input, shape index: {}]   ;;  %s2267_s2 = inlined_call_operand.vmem [shape: bf16[96,128], index: 2, kind: input, shape index: {}]   ;;  %s2268_s3 = inlined_call_operand.vmem [shape: f32[1,128], index: 3, kind: input, shape index: {}]   ;;  %s2269_s4 = inlined_call_operand.vmem [shape: bf16[64,128], index: 4, kind: input, shape index: {}]   ;;  %s2270_s5 = inlined_call_operand.vmem [shape: f32[1,128], index: 5, kind: input, shape index: {}]   ;;  %s2271_s6 = inlined_call_operand.vmem [shape: bf16[32,1], index: 6, kind: input, shape index: {}]   ;;  %s2272_s7 = inlined_call_operand.<no memory space> [shape: f32[1,1], index: 7, kind: input, shape index: {}]   ;;  %s2273_s8 = inlined_call_operand.vmem [shape: f32[2,1], index: 8, kind: output, shape index: {0}]   ;;  %s2274_s9 = inlined_call_operand.hbm [shape: f32[2,2,32], index: 9, kind: output, shape index: {1}]   ;;  %s2275_s10 = inlined_call_operand.hbm [shape: f32[2,2,32], index: 10, kind: output, shape index: {2}]  }
   0x1   :  { %v16_v0 = vstv %s2272_s7 }
   0x2   :  { %17 = vst [vmem:[#allocation4] sm:$0x1] %v16_v0 }
   0x3   :  { %18 = vsyncpa [#allocation6], 0  ;;  %v37_v1 = vld [vmem:[%s2265_s0] sm:$0xff]  ;;  %v66_v2 = vld [vmem:[%s2266_s1 + $0x30] sm:$0x3]  ;;  %v1768_v3 = vmov 0  }
   0x4   :  { %1578 = vset.pattern.permute.xlu0 %v1768_v3  ;;  %v92_v4 = vunpack.c.l.b16 %v66_v2  ;;  %vm110_vm0 = vcmask 1041408  }
   0x5   :  { %42 = vperm.xlu0 %1578, %v37_v1  }
   0x6   :  { %v99_v5 = vpack.c.b16 %v92_v4, %v92_v4 }
   0x7   :  { %19 = vsyncpa [#allocation8], 0  ;;  %v1557_v7 = vld [vmem:[%s2266_s1 + $0x28] sm:$0xff]  ;;  %v1556_v9 = vld [vmem:[%s2266_s1 + $0x20] sm:$0xff]  ;;  %v39_v17 = vlaneseq  ;;  %v1769_v21 = vmov 0.0   ;;  %vm106_vm3 = vcmask 818176  }
   0x8   :  { %v112_v6 = vsel %vm110_vm0, %v99_v5, 0  ;;  %v38_v8 = vld [vmem:[%s2265_s0 + $0x8] sm:$0xff]  ;;  %v1555_v10 = vld [vmem:[%s2266_s1 + $0x18] sm:$0xff]  ;;  %v1554_v11 = vld [vmem:[%s2266_s1 + $0x10] sm:$0xff]  ;;  %vm152_vm4 = vcmask 516096   ;;  %vm154_vm5 = vcmask 778752  }
   0x9   :  { %115 = vmatpush.bf16.msra.mxu0 %v112_v6  ;;  %v1553_v12 = vld [vmem:[%s2266_s1 + $0x8] sm:$0xff]  ;;  %v1552_v13 = vld [vmem:[%s2266_s1] sm:$0xff]  ;;  %v1879_v16 = vld [vmem:[%s2267_s2 + $0x18] sm:$0xff]  ;;  %v40_v19 = vand.u32 127, %v39_v17  ;;  %vm196_vm6 = vcmask 785408   ;;  %s1770_s22 = smov 64  }
   0xa   :  { %v1865_v14 = vld [vmem:[%s2267_s2 + $0x28] sm:$0xff]  ;;  %v1871_v15 = vld [vmem:[%s2267_s2 + $0x20] sm:$0xff]  ;;  %v1889_v25 = vld [vmem:[%s2267_s2 + $0x10] sm:$0xff]  ;;  %s1771_s23 = smov 32   ;;  %vm253_vm11 = vcmask 1040384   ;;  %s1772_s28 = smov 96  }
   0xb   :  { %202 = vmatpush.bf16.msra.mxu1 %v1865_v14  ;;  %363 = vmatpush.bf16.msra.mxu3 %v1865_v14  ;;  %v1897_v26 = vld [vmem:[%s2267_s2 + $0x8] sm:$0xff]  ;;  %v1905_v27 = vld [vmem:[%s2267_s2] sm:$0xff]  ;;  %v1949_v62 = vld [vmem:[%s2269_s4 + $0x18] sm:$0xff]  ;;  %vm261_vm12 = vcmask 253952   ;;  %vm263_vm13 = vcmask 516352   ;;  %vm293_vm14 = vcmask 523264  }
   0xc   :  { %v1937_v38 = vld [vmem:[%s2268_s3] ss:$0 sm:$0xff]  ;;  %301 = vmatpush.bf16.msra.mxu2 %v1949_v62  ;;  %v1955_v63 = vld [vmem:[%s2269_s4 + $0x10] sm:$0xff]  ;;  %v1970_v6 = vld [vmem:[%s2269_s4 + $0x8] sm:$0xff]  ;;  %s1411_s19 = sshll.u32 %s2274_s9, 4  ;;  %s1773_s20 = smov [#allocation5]   ;;  %s1412_s19 = int_to_ptr.hbm [resolvable:$true] %s1411_s19 }
   0xd   :  { %45 = vperm.xlu0 %1578, %v38_v8   ;;  %116 = vmatpush.bf16.msra.mxu0 %v1557_v7  ;;  %v1979_v7 = vld [vmem:[%s2269_s4] sm:$0xff]  ;;  %s1409_s2 = sshll.u32 %s1773_s20, 4  ;;  %s1774_s21 = smov 2   ;;  %s1410_s2 = int_to_ptr.vmem [resolvable:$true] %s1409_s2 }
   0xe   :  { %s1424_s24 = sshll.u32 %s2275_s10, 4  ;;  %s1775_s25 = smov [#allocation7]   ;;  %s1425_s24 = int_to_ptr.hbm [resolvable:$true] %s1424_s24 }
   0xf   :  { %203 = vmatpush.bf16.msra.mxu1 %v1871_v15  ;;  %364 = vmatpush.bf16.msra.mxu3 %v1871_v15  ;;  %s1422_s26 = sshll.u32 %s1775_s25, 4  ;;  %s1423_s26 = int_to_ptr.vmem [resolvable:$true] %s1422_s26 }
  0x10   :  { %302 = vmatpush.bf16.msra.mxu2 %v1955_v63 }
  0x11   :  { %117 = vmatpush.bf16.msra.mxu0 %v1556_v9 }
  0x13   :  { %204 = vmatpush.bf16.msra.mxu1 %v1879_v16  ;;  %365 = vmatpush.bf16.msra.mxu3 %v1879_v16 }
  0x14   :  { %303 = vmatpush.bf16.msra.mxu2 %v1970_v6 }
  0x15   :  { %118 = vmatpush.bf16.msra.mxu0 %v1555_v10 }
  0x17   :  { %205 = vmatpush.bf16.msra.mxu1 %v1889_v25  ;;  %366 = vmatpush.bf16.msra.mxu3 %v1889_v25 }
  0x18   :  { %304 = vmatpush.bf16.msra.mxu2 %v1979_v7 }
  0x19   :  { %119 = vmatpush.bf16.msra.mxu0 %v1554_v11 }
  0x1b   :  { %206 = vmatpush.bf16.msra.mxu1 %v1897_v26  ;;  %367 = vmatpush.bf16.msra.mxu3 %v1897_v26 }
  0x1c   :  { %441 = vmatpush.bf16.msrb.mxu2 %v1949_v62 }
  0x1d   :  { %120 = vmatpush.bf16.msra.mxu0 %v1553_v12 }
  0x1f   :  { %207 = vmatpush.bf16.msra.mxu1 %v1905_v27  ;;  %368 = vmatpush.bf16.msra.mxu3 %v1905_v27 }
  0x20   :  { %442 = vmatpush.bf16.msrb.mxu2 %v1955_v63 }
  0x21   :  { %121 = vmatpush.bf16.msra.mxu0 %v1552_v13 }
  0x23   :  { %502 = vmatpush.bf16.msrb.mxu1 %v1865_v14  ;;  %580 = vmatpush.bf16.msrb.mxu3 %v1949_v62 }
  0x24   :  { %443 = vmatpush.bf16.msrb.mxu2 %v1970_v6 }
  0x25   :  { %641 = vmatpush.bf16.msrb.mxu0 %v1865_v14 }
  0x27   :  { %503 = vmatpush.bf16.msrb.mxu1 %v1871_v15  ;;  %581 = vmatpush.bf16.msrb.mxu3 %v1955_v63 }
  0x28   :  { %444 = vmatpush.bf16.msrb.mxu2 %v1979_v7 }
  0x29   :  { %642 = vmatpush.bf16.msrb.mxu0 %v1871_v15 }
  0x2b   :  { %504 = vmatpush.bf16.msrb.mxu1 %v1879_v16  ;;  %582 = vmatpush.bf16.msrb.mxu3 %v1970_v6 }
  0x2d   :  { %643 = vmatpush.bf16.msrb.mxu0 %v1879_v16 }
  0x2f   :  { %505 = vmatpush.bf16.msrb.mxu1 %v1889_v25  ;;  %583 = vmatpush.bf16.msrb.mxu3 %v1979_v7 }
  0x31   :  { %644 = vmatpush.bf16.msrb.mxu0 %v1889_v25 }
  0x33   :  { %506 = vmatpush.bf16.msrb.mxu1 %v1897_v26 }
  0x35   :  { %645 = vmatpush.bf16.msrb.mxu0 %v1897_v26 }
  0x37   :  { %507 = vmatpush.bf16.msrb.mxu1 %v1905_v27 }
  0x39   :  { %646 = vmatpush.bf16.msrb.mxu0 %v1905_v27 }
  0x77   :  { %v43_v18 = vpop.permute.xlu0 %42 }
  0x78   :  { %vm47_vm1 = vcmp.eq.s32.totalorder %v43_v18, %v40_v19 }
  0x79   :  { %v1443_v22 = vsel %vm47_vm1, 1.0, %v1769_v21 }
  0x7f   :  { %v46_v20 = vpop.permute.xlu0 %45 }
  0x80   :  { %vm48_vm2 = vcmp.eq.s32.totalorder %v46_v20, %v40_v19 }
  0x81   :  { %v1444_v23 = vsel %vm48_vm2, 1.0, %v1769_v21 }
  0x82   :  { %v53_v24 = vpack.c.bf16 %v1444_v23, %v1443_v22 }
  0x84   :  { %1469 = vmatmul.msk.bf16.vlgmr.msra.gmra.mxu0 %vm106_vm3, %v53_v24 }
  0x85   :  { %994 = vmatpush.bf16.msra.mxu0 %v1949_v62 }
  0x89   :  { %995 = vmatpush.bf16.msra.mxu0 %v1955_v63 }
  0x8d   :  { %996 = vmatpush.bf16.msra.mxu0 %v1970_v6 }
  0x91   :  { %997 = vmatpush.bf16.msra.mxu0 %v1979_v7 }
 0x101   :  { %v123_v28 = vpop.f32.mrf.mxu0 }
 0x102   :  { %v128_v29 = vpack.c.bf16 %v123_v28, %v123_v28 }
 0x104   :  { %153 = vst.msk [vmem:[#allocation2] sm:$0x1] %vm152_vm4, %v128_v29 }
 0x105   :  { %155 = vst.msk [vmem:[#allocation2] sm:$0x1] %vm154_vm5, %v1768_v3 }
 0x106   :  { %348 = vst [vmem:[#allocation1] sm:$0xff] %v128_v29 }
 0x109   :  { %v125_v33 = vpop.f32.mrf.mxu0 }
 0x10a   :  { %v1923_v34 = vpack.c.bf16 %v125_v33, %v125_v33 }
 0x10c   :  { %v156_v30 = vld [vmem:[#allocation2] sm:$0x1] }
 0x10d   :  { %v350_v31 = vld [vmem:[#allocation1 + $0x1] ss:$4 sm:$0xff]  ;;  %1494 = vmatmul.msk.bf16.vlgmr.msra.gmra.mxu1 %vm196_vm6, %v156_v30 }
 0x10e   :  { %487 = vst [vmem:[#allocation1] sm:$0xff] %v128_v29  ;;  %854 = vmatpush.bf16.msra.mxu1 %v1949_v62 }
 0x10f   :  { %352 = vst.msk [vmem:[#allocation2] sm:$0x1] %vm152_vm4, %v350_v31 }
 0x112   :  { %855 = vmatpush.bf16.msra.mxu1 %v1955_v63 }
 0x115   :  { %v1921_v32 = vld [vmem:[#allocation1 + $0x2] ss:$4 sm:$0xff] }
 0x116   :  { %626 = vst [vmem:[#allocation1] sm:$0xff] %v128_v29  ;;  %856 = vmatpush.bf16.msra.mxu1 %v1970_v6 }
 0x11a   :  { %857 = vmatpush.bf16.msra.mxu1 %v1979_v7 }
 0x11d   :  { %v1925_v35 = vld [vmem:[#allocation1 + $0x3] ss:$4 sm:$0xff] }
 0x11e   :  { %901 = vst [vmem:[#allocation1] sm:$0xff] %v1923_v34 }
 0x125   :  { %v1928_v36 = vld [vmem:[#allocation1 + $0x1] ss:$4 sm:$0xff] }
 0x126   :  { %1040 = vst [vmem:[#allocation1] sm:$0xff] %v1923_v34 }
 0x12d   :  { %v1931_v37 = vld [vmem:[#allocation1 + $0x2] ss:$4 sm:$0xff] }
 0x12e   :  { %1179 = vst [vmem:[#allocation1] sm:$0xff] %v1923_v34 }
 0x18a   :  { %v209_v39 = vpop.f32.mrf.mxu1 }
 0x18b   :  { %v210_v40 = vadd.f32 %v1937_v38, %v209_v39 }
 0x18d   :  { %1582 = vtanh.f32 %v210_v40  ;;  %v1495_v43 = vmul.f32 -1.442695, %v210_v40 }
 0x18f   :  { %1584 = vpow2.f32 %v1495_v43 }
 0x192   :  { %v211_v41 = vpop.f32.mrf.mxu1 }
 0x193   :  { %v1583_v42 = vpop.eup %1582 }
 0x194   :  { %235 = vrot.lane.b32.xlu1 %v1583_v42, %s1770_s22 }
 0x195   :  { %v1585_v44 = vpop.eup %1584 }
 0x196   :  { %v216_v45 = vadd.f32 1.0, %v1585_v44 }
 0x198   :  { %1586 = vrcp.f32 %v216_v45  ;;  %v228_v51 = vand.u32 2147483648, %v216_v45  ;;  %vm222_vm8 = vweird.f32 %v216_v45  ;;  %v226_v52 = vand.u32 2147483647, %v216_v45 }
 0x19a   :  { %v229_v54 = vor.u32 1.1754944e-38, %v228_v51  ;;  %vm227_vm10 = vcmp.eq.f32.partialorder %v226_v52, 8.507059e+37 }
 0x19e   :  { %v1587_v46 = vpop.eup %1586 }
 0x19f   :  { %v218_v47 = vmul.f32 %v1587_v46, %v216_v45  ;;  %vm223_vm7 = vweird.f32 %v1587_v46 }
 0x1a0   :  { %vm224_vm9 = vmor %vm222_vm8, %vm223_vm7 }
 0x1a1   :  { %v219_v48 = vsub.f32 1.0, %v218_v47 }
 0x1a3   :  { %v220_v49 = vmul.f32 %v1587_v46, %v219_v48 }
 0x1a5   :  { %v221_v50 = vadd.f32 %v1587_v46, %v220_v49 }
 0x1a7   :  { %v225_v53 = vsel %vm224_vm9, %v1587_v46, %v221_v50 }
 0x1a8   :  { %v230_v56 = vsel %vm227_vm10, %v229_v54, %v225_v53 }
 0x1a9   :  { %v233_v58 = vmul.f32 0.0, %v230_v56 }
 0x206   :  { %v236_v55 = vpop.permute.xlu1 %235 }
 0x207   :  { %v238_v57 = vmul.f32 %v236_v55, %v230_v56 }
 0x209   :  { %240 = vrot.lane.b32.xlu1 %v238_v57, %s1771_s23 }
 0x27b   :  { %v241_v59 = vpop.permute.xlu1 %240 }
 0x27c   :  { %v1942_v60 = vadd.f32 %v241_v59, %v233_v58 }
 0x27e   :  { %1588 = vtanh.f32 %v1942_v60 }
 0x284   :  { %v1589_v61 = vpop.eup %1588 }
 0x285   :  { %246 = vrot.lane.b32.xlu2 %v1589_v61, %s1770_s22 }
 0x2df   :  { %v247_v0 = vpop.permute.xlu2 %246 }
 0x2e0   :  { %v249_v1 = vmul.f32 %v247_v0, %v230_v56 }
 0x2e2   :  { %v250_v2 = vpack.c.bf16 %v249_v1, %v249_v1 }
 0x2e4   :  { %v252_v4 = vrot.slane %v250_v2, 3 }
 0x2e6   :  { %v256_v5 = vsel %vm253_vm11, %v250_v2, %v252_v4 }
 0x2e7   :  { %353 = vrot.lane.b32.xlu0 %v256_v5, %s1772_s28  ;;  %258 = vrot.lane.b32.xlu2 %v256_v5, %s1771_s23 }
 0x341   :  { %v259_v8 = vpop.permute.xlu2 %258 }
 0x342   :  { %262 = vst.msk [vmem:[#allocation3] sm:$0x1] %vm261_vm12, %v259_v8 }
 0x343   :  { %264 = vst.msk [vmem:[#allocation3] sm:$0x1] %vm263_vm13, %v1768_v3  ;;  %v2010_v3 = vld [vmem:[%s2270_s5] ss:$0 sm:$0xff] }
 0x34a   :  { %v265_v9 = vld [vmem:[#allocation3] sm:$0x1] }
 0x34b   :  { %1512 = vmatmul.msk.bf16.vlgmr.msra.gmra.mxu2 %vm293_vm14, %v265_v9 }
 0x34c   :  { %719 = vmatpush.bf16.msra.mxu2 %v1949_v62 }
 0x350   :  { %720 = vmatpush.bf16.msra.mxu2 %v1955_v63 }
 0x354   :  { %721 = vmatpush.bf16.msra.mxu2 %v1970_v6 }
 0x358   :  { %722 = vmatpush.bf16.msra.mxu2 %v1979_v7 }
 0x359   :  { %v354_v10 = vpop.permute.xlu0 %353 }
 0x35a   :  { %356 = vst.msk [vmem:[#allocation2] sm:$0x1] %vm154_vm5, %v354_v10 }
 0x361   :  { %v357_v11 = vld [vmem:[#allocation2] sm:$0x1] }
 0x362   :  { %491 = vst.msk [vmem:[#allocation2] sm:$0x1] %vm152_vm4, %v1921_v32  ;;  %1514 = vmatmul.msk.bf16.vlgmr.msra.gmra.mxu3 %vm196_vm6, %v357_v11 }
 0x363   :  { %776 = vmatpush.bf16.msra.mxu3 %v1865_v14 }
 0x367   :  { %777 = vmatpush.bf16.msra.mxu3 %v1871_v15 }
 0x36b   :  { %778 = vmatpush.bf16.msra.mxu3 %v1879_v16 }
 0x36f   :  { %779 = vmatpush.bf16.msra.mxu3 %v1889_v25 }
 0x373   :  { %780 = vmatpush.bf16.msra.mxu3 %v1897_v26 }
 0x377   :  { %781 = vmatpush.bf16.msra.mxu3 %v1905_v27 }
 0x3ce   :  { %v306_v12 = vpop.f32.mrf.mxu2 }
 0x3cf   :  { %v307_v13 = vadd.f32 %v2010_v3, %v306_v12 }
 0x3d1   :  { %1590 = vtanh.f32 %v307_v13  ;;  %v1513_v23 = vmul.f32 -1.442695, %v307_v13 }
 0x3d6   :  { %v308_v17 = vpop.f32.mrf.mxu2 }
 0x3d7   :  { %v1591_v18 = vpop.eup %1590 }
 0x3d8   :  { %332 = vrot.lane.b32.xlu2 %v1591_v18, %s1770_s22 }
 0x3e5   :  { %v370_v19 = vpop.f32.mrf.mxu3 }
 0x3e6   :  { %v371_v20 = vadd.f32 %v1937_v38, %v370_v19 }
 0x3e8   :  { %1592 = vtanh.f32 %v371_v20  ;;  %v1515_v46 = vmul.f32 -1.442695, %v371_v20 }
 0x3e9   :  { %1594 = vpow2.f32 %v1513_v23 }
 0x3ed   :  { %v372_v21 = vpop.f32.mrf.mxu3 }
 0x3ee   :  { %v1593_v22 = vpop.eup %1592 }
 0x3ef   :  { %396 = vrot.lane.b32.xlu1 %v1593_v22, %s1770_s22  ;;  %v1595_v24 = vpop.eup %1594 }
 0x3f0   :  { %v313_v28 = vadd.f32 1.0, %v1595_v24 }
 0x3f2   :  { %1596 = vrcp.f32 %v313_v28  ;;  %vm319_vm15 = vweird.f32 %v313_v28  ;;  %v325_v33 = vand.u32 2147483648, %v313_v28  ;;  %v323_v40 = vand.u32 2147483647, %v313_v28 }
 0x3f3   :  { %1598 = vpow2.f32 %v1515_v46 }
 0x3f4   :  { %v326_v41 = vor.u32 1.1754944e-38, %v325_v33  ;;  %vm324_vm2 = vcmp.eq.f32.partialorder %v323_v40, 8.507059e+37 }
 0x3f8   :  { %v1597_v29 = vpop.eup %1596 }
 0x3f9   :  { %v315_v30 = vmul.f32 %v1597_v29, %v313_v28  ;;  %vm320_vm0 = vweird.f32 %v1597_v29  ;;  %v1599_v47 = vpop.eup %1598 }
 0x3fa   :  { %vm321_vm1 = vmor %vm319_vm15, %vm320_vm0  ;;  %v377_v48 = vadd.f32 1.0, %v1599_v47 }
 0x3fb   :  { %v316_v31 = vsub.f32 1.0, %v315_v30 }
 0x3fc   :  { %1600 = vrcp.f32 %v377_v48  ;;  %v389_v54 = vand.u32 2147483648, %v377_v48  ;;  %vm383_vm7 = vweird.f32 %v377_v48  ;;  %v387_v55 = vand.u32 2147483647, %v377_v48 }
 0x3fd   :  { %v317_v32 = vmul.f32 %v1597_v29, %v316_v31 }
 0x3fe   :  { %v390_v57 = vor.u32 1.1754944e-38, %v389_v54  ;;  %vm388_vm9 = vcmp.eq.f32.partialorder %v387_v55, 8.507059e+37 }
 0x3ff   :  { %v318_v39 = vadd.f32 %v1597_v29, %v317_v32 }
 0x401   :  { %v322_v42 = vsel %vm321_vm1, %v1597_v29, %v318_v39 }
 0x402   :  { %v327_v44 = vsel %vm324_vm2, %v326_v41, %v322_v42  ;;  %v1601_v49 = vpop.eup %1600 }
 0x403   :  { %v379_v50 = vmul.f32 %v1601_v49, %v377_v48  ;;  %vm384_vm3 = vweird.f32 %v1601_v49  ;;  %v330_v0 = vmul.f32 0.0, %v327_v44 }
 0x404   :  { %vm385_vm8 = vmor %vm383_vm7, %vm384_vm3 }
 0x405   :  { %v380_v51 = vsub.f32 1.0, %v379_v50 }
 0x407   :  { %v381_v52 = vmul.f32 %v1601_v49, %v380_v51 }
 0x409   :  { %v382_v53 = vadd.f32 %v1601_v49, %v381_v52 }
 0x40b   :  { %v386_v56 = vsel %vm385_vm8, %v1601_v49, %v382_v53 }
 0x40c   :  { %v391_v59 = vsel %vm388_vm9, %v390_v57, %v386_v56 }
 0x40d   :  { %v394_v5 = vmul.f32 %v391_v59, %v1942_v60 }
 0x432   :  { %v333_v43 = vpop.permute.xlu2 %332 }
 0x433   :  { %v335_v45 = vmul.f32 %v333_v43, %v327_v44 }
 0x435   :  { %337 = vrot.lane.b32.xlu1 %v335_v45, %s1771_s23 }
 0x461   :  { %v397_v58 = vpop.permute.xlu1 %396 }
 0x462   :  { %v399_v61 = vmul.f32 %v397_v58, %v391_v59 }
 0x464   :  { %401 = vrot.lane.b32.xlu0 %v399_v61, %s1771_s23 }
 0x4a7   :  { %v338_v1 = vpop.permute.xlu1 %337 }
 0x4a8   :  { %v2018_v2 = vadd.f32 %v338_v1, %v330_v0 }
 0x4aa   :  { %1602 = vtanh.f32 %v2018_v2 }
 0x4b0   :  { %v1603_v4 = vpop.eup %1602 }
 0x4b1   :  { %343 = vrot.lane.b32.xlu0 %v1603_v4, %s1770_s22 }
 0x4d6   :  { %v402_v8 = vpop.permute.xlu0 %401 }
 0x4d7   :  { %v2023_v9 = vadd.f32 %v402_v8, %v394_v5 }
 0x4d9   :  { %1604 = vtanh.f32 %v2023_v9 }
 0x4df   :  { %v1605_v10 = vpop.eup %1604 }
 0x4e0   :  { %407 = vrot.lane.b32.xlu2 %v1605_v10, %s1770_s22 }
 0x523   :  { %v344_v11 = vpop.permute.xlu0 %343 }
 0x524   :  { %v346_v12 = vmul.f32 %v344_v11, %v327_v44 }
 0x526   :  { %v422_v13 = vpack.c.bf16 %v346_v12, %v346_v12 }
 0x528   :  { %v424_v17 = vrot.slane %v422_v13, 3 }
 0x52a   :  { %v427_v18 = vsel %vm253_vm11, %v422_v13, %v424_v17 }
 0x52b   :  { %429 = vrot.lane.b32.xlu2 %v427_v18, %s1770_s22 }
 0x53a   :  { %v408_v19 = vpop.permute.xlu2 %407 }
 0x53b   :  { %v410_v20 = vmul.f32 %v408_v19, %v391_v59 }
 0x53d   :  { %v411_v21 = vpack.c.bf16 %v410_v20, %v410_v20 }
 0x53f   :  { %v413_v60 = vrot.slane %v411_v21, 3 }
 0x541   :  { %v416_v22 = vsel %vm253_vm11, %v411_v21, %v413_v60 }
 0x542   :  { %418 = vrot.lane.b32.xlu1 %v416_v22, %s1771_s23  ;;  %492 = vrot.lane.b32.xlu0 %v416_v22, %s1772_s28 }
 0x585   :  { %v430_v28 = vpop.permute.xlu2 %429 }
 0x5b4   :  { %v419_v23 = vpop.permute.xlu1 %418  ;;  %v493_v24 = vpop.permute.xlu0 %492 }
 0x5b5   :  { %421 = vst.msk [vmem:[#allocation3] sm:$0x1] %vm261_vm12, %v419_v23 }
 0x5b6   :  { %432 = vst.msk [vmem:[#allocation3] sm:$0x1] %vm263_vm13, %v430_v28 }
 0x5b7   :  { %495 = vst.msk [vmem:[#allocation2] sm:$0x1] %vm154_vm5, %v493_v24 }
 0x5bd   :  { %v433_v29 = vld [vmem:[#allocation3] sm:$0x1] }
 0x5be   :  { %v496_v30 = vld [vmem:[#allocation2] sm:$0x1]  ;;  %1516 = vmatmul.msk.bf16.vlgmr.msrb.gmra.mxu2 %vm293_vm14, %v433_v29 }
 0x5bf   :  { %630 = vst.msk [vmem:[#allocation2] sm:$0x1] %vm152_vm4, %v1925_v35  ;;  %1518 = vmatmul.msk.bf16.vlgmr.msrb.gmra.mxu1 %vm196_vm6, %v496_v30  ;;  %916 = vmatpush.bf16.msrb.mxu2 %v1865_v14 }
 0x5c0   :  { %1055 = vmatpush.bf16.msrb.mxu1 %v1865_v14 }
 0x5c3   :  { %917 = vmatpush.bf16.msrb.mxu2 %v1871_v15 }
 0x5c4   :  { %1056 = vmatpush.bf16.msrb.mxu1 %v1871_v15 }
 0x5c7   :  { %918 = vmatpush.bf16.msrb.mxu2 %v1879_v16 }
 0x5c8   :  { %1057 = vmatpush.bf16.msrb.mxu1 %v1879_v16 }
 0x5cb   :  { %919 = vmatpush.bf16.msrb.mxu2 %v1889_v25 }
 0x5cc   :  { %1058 = vmatpush.bf16.msrb.mxu1 %v1889_v25 }
 0x5cf   :  { %920 = vmatpush.bf16.msrb.mxu2 %v1897_v26 }
 0x5d0   :  { %1059 = vmatpush.bf16.msrb.mxu1 %v1897_v26 }
 0x5d3   :  { %921 = vmatpush.bf16.msrb.mxu2 %v1905_v27 }
 0x5d4   :  { %1060 = vmatpush.bf16.msrb.mxu1 %v1905_v27 }
 0x63c   :  { %v509_v35 = vpop.f32.mrf.mxu1 }
 0x63d   :  { %v510_v31 = vadd.f32 %v1937_v38, %v509_v35 }
 0x63f   :  { %1606 = vtanh.f32 %v510_v31  ;;  %v1519_v46 = vmul.f32 -1.442695, %v510_v31 }
 0x641   :  { %v446_v32 = vpop.f32.mrf.mxu2 }
 0x642   :  { %v447_v33 = vadd.f32 %v2010_v3, %v446_v32 }
 0x644   :  { %1608 = vtanh.f32 %v447_v33  ;;  %v511_v39 = vpop.f32.mrf.mxu1  ;;  %v1517_v43 = vmul.f32 -1.442695, %v447_v33 }
 0x645   :  { %v1607_v40 = vpop.eup %1606 }
 0x646   :  { %535 = vrot.lane.b32.xlu1 %v1607_v40, %s1770_s22  ;;  %1610 = vpow2.f32 %v1517_v43 }
 0x649   :  { %v448_v41 = vpop.f32.mrf.mxu2 }
 0x64a   :  { %v1609_v42 = vpop.eup %1608 }
 0x64b   :  { %472 = vrot.lane.b32.xlu2 %v1609_v42, %s1770_s22 }
 0x64c   :  { %v1611_v44 = vpop.eup %1610 }
 0x64d   :  { %v453_v45 = vadd.f32 1.0, %v1611_v44 }
 0x64f   :  { %1612 = vrcp.f32 %v453_v45  ;;  %v465_v54 = vand.u32 2147483648, %v453_v45  ;;  %vm459_vm15 = vweird.f32 %v453_v45  ;;  %v463_v55 = vand.u32 2147483647, %v453_v45 }
 0x650   :  { %1614 = vpow2.f32 %v1519_v46 }
 0x651   :  { %v466_v58 = vor.u32 1.1754944e-38, %v465_v54  ;;  %vm464_vm1 = vcmp.eq.f32.partialorder %v463_v55, 8.507059e+37 }
 0x655   :  { %v1613_v47 = vpop.eup %1612 }
 0x656   :  { %v455_v48 = vmul.f32 %v1613_v47, %v453_v45  ;;  %v1615_v49 = vpop.eup %1614  ;;  %vm460_vm10 = vweird.f32 %v1613_v47 }
 0x657   :  { %v516_v51 = vadd.f32 1.0, %v1615_v49  ;;  %vm461_vm0 = vmor %vm459_vm15, %vm460_vm10 }
 0x658   :  { %v456_v50 = vsub.f32 1.0, %v455_v48 }
 0x659   :  { %1616 = vrcp.f32 %v516_v51  ;;  %v528_v10 = vand.u32 2147483648, %v516_v51  ;;  %vm522_vm3 = vweird.f32 %v516_v51  ;;  %v526_v11 = vand.u32 2147483647, %v516_v51 }
 0x65a   :  { %v457_v52 = vmul.f32 %v1613_v47, %v456_v50 }
 0x65b   :  { %v529_v13 = vor.u32 1.1754944e-38, %v528_v10  ;;  %vm527_vm8 = vcmp.eq.f32.partialorder %v526_v11, 8.507059e+37 }
 0x65c   :  { %v458_v53 = vadd.f32 %v1613_v47, %v457_v52 }
 0x65e   :  { %v462_v57 = vsel %vm461_vm0, %v1613_v47, %v458_v53 }
 0x65f   :  { %v1617_v56 = vpop.eup %1616  ;;  %v467_v61 = vsel %vm464_vm1, %v466_v58, %v462_v57 }
 0x660   :  { %v518_v0 = vmul.f32 %v1617_v56, %v516_v51  ;;  %vm523_vm2 = vweird.f32 %v1617_v56  ;;  %v470_v20 = vmul.f32 %v467_v61, %v2018_v2 }
 0x661   :  { %vm524_vm7 = vmor %vm522_vm3, %vm523_vm2 }
 0x662   :  { %v519_v4 = vsub.f32 1.0, %v518_v0 }
 0x664   :  { %v520_v5 = vmul.f32 %v1617_v56, %v519_v4 }
 0x666   :  { %v521_v8 = vadd.f32 %v1617_v56, %v520_v5 }
 0x668   :  { %v525_v12 = vsel %vm524_vm7, %v1617_v56, %v521_v8 }
 0x669   :  { %v530_v18 = vsel %vm527_vm8, %v529_v13, %v525_v12 }
 0x66a   :  { %v533_v23 = vmul.f32 %v530_v18, %v2023_v9 }
 0x6a5   :  { %v473_v59 = vpop.permute.xlu2 %472 }
 0x6a6   :  { %v475_v1 = vmul.f32 %v473_v59, %v467_v61 }
 0x6a8   :  { %477 = vrot.lane.b32.xlu1 %v475_v1, %s1771_s23 }
 0x6b8   :  { %v536_v17 = vpop.permute.xlu1 %535 }
 0x6b9   :  { %v538_v19 = vmul.f32 %v536_v17, %v530_v18 }
 0x6bb   :  { %540 = vrot.lane.b32.xlu0 %v538_v19, %s1771_s23 }
 0x71a   :  { %v478_v21 = vpop.permute.xlu1 %477 }
 0x71b   :  { %v2058_v60 = vadd.f32 %v478_v21, %v470_v20 }
 0x71d   :  { %1618 = vtanh.f32 %v2058_v60 }
 0x723   :  { %v1619_v22 = vpop.eup %1618 }
 0x724   :  { %483 = vrot.lane.b32.xlu0 %v1619_v22, %s1770_s22 }
 0x72d   :  { %v541_v24 = vpop.permute.xlu0 %540 }
 0x72e   :  { %v2063_v28 = vadd.f32 %v541_v24, %v533_v23 }
 0x730   :  { %1620 = vtanh.f32 %v2063_v28 }
 0x736   :  { %v1621_v29 = vpop.eup %1620 }
 0x737   :  { %546 = vrot.lane.b32.xlu2 %v1621_v29, %s1770_s22 }
 0x791   :  { %v547_v30 = vpop.permute.xlu2 %546 }
 0x792   :  { %v549_v2 = vmul.f32 %v547_v30, %v530_v18 }
 0x794   :  { %v550_v35 = vpack.c.bf16 %v549_v2, %v549_v2 }
 0x796   :  { %v552_v31 = vrot.slane %v550_v35, 3  ;;  %v484_v32 = vpop.permute.xlu0 %483 }
 0x797   :  { %v486_v33 = vmul.f32 %v484_v32, %v467_v61 }
 0x798   :  { %v555_v39 = vsel %vm253_vm11, %v550_v35, %v552_v31 }
 0x799   :  { %v561_v40 = vpack.c.bf16 %v486_v33, %v486_v33  ;;  %631 = vrot.lane.b32.xlu2 %v555_v39, %s1772_s28  ;;  %557 = vrot.lane.b32.xlu1 %v555_v39, %s1771_s23 }
 0x79b   :  { %v563_v9 = vrot.slane %v561_v40, 3 }
 0x79d   :  { %v566_v41 = vsel %vm253_vm11, %v561_v40, %v563_v9 }
 0x79e   :  { %568 = vrot.lane.b32.xlu0 %v566_v41, %s1770_s22 }
 0x7f3   :  { %v632_v42 = vpop.permute.xlu2 %631 }
 0x7f4   :  { %634 = vst.msk [vmem:[#allocation2] sm:$0x1] %vm154_vm5, %v632_v42 }
 0x7fb   :  { %v635_v43 = vld [vmem:[#allocation2] sm:$0x1] }
 0x7fc   :  { %1522 = vmatmul.msk.bf16.vlgmr.msrb.gmra.mxu0 %vm196_vm6, %v635_v43  ;;  %765 = vst.msk [vmem:[#allocation2] sm:$0x1] %vm152_vm4, %v1923_v34 }
 0x7fd   :  { %1194 = vmatpush.bf16.msrb.mxu0 %v1865_v14 }
 0x801   :  { %1195 = vmatpush.bf16.msrb.mxu0 %v1871_v15 }
 0x805   :  { %1196 = vmatpush.bf16.msrb.mxu0 %v1879_v16 }
 0x809   :  { %1197 = vmatpush.bf16.msrb.mxu0 %v1889_v25 }
 0x80b   :  { %v558_v44 = vpop.permute.xlu1 %557 }
 0x80c   :  { %560 = vst.msk [vmem:[#allocation3] sm:$0x1] %vm261_vm12, %v558_v44 }
 0x80d   :  { %1198 = vmatpush.bf16.msrb.mxu0 %v1897_v26 }
 0x810   :  { %v569_v45 = vpop.permute.xlu0 %568 }
 0x811   :  { %571 = vst.msk [vmem:[#allocation3] sm:$0x1] %vm263_vm13, %v569_v45  ;;  %1199 = vmatpush.bf16.msrb.mxu0 %v1905_v27 }
 0x818   :  { %v572_v46 = vld [vmem:[#allocation3] sm:$0x1] }
 0x819   :  { %1520 = vmatmul.msk.bf16.vlgmr.msrb.gmra.mxu3 %vm293_vm14, %v572_v46 }
 0x81a   :  { %1133 = vmatpush.bf16.msrb.mxu3 %v1949_v62 }
 0x81e   :  { %1134 = vmatpush.bf16.msrb.mxu3 %v1955_v63 }
 0x822   :  { %1135 = vmatpush.bf16.msrb.mxu3 %v1970_v6 }
 0x826   :  { %1136 = vmatpush.bf16.msrb.mxu3 %v1979_v7 }
 0x879   :  { %v648_v14 = vpop.f32.mrf.mxu0 }
 0x87a   :  { %v649_v15 = vadd.f32 %v1937_v38, %v648_v14 }
 0x87c   :  { %1622 = vtanh.f32 %v649_v15  ;;  %v1523_v48 = vmul.f32 -1.442695, %v649_v15 }
 0x881   :  { %v650_v16 = vpop.f32.mrf.mxu0 }
 0x882   :  { %v1623_v25 = vpop.eup %1622 }
 0x883   :  { %674 = vrot.lane.b32.xlu1 %v1623_v25, %s1770_s22 }
 0x89c   :  { %v585_v26 = vpop.f32.mrf.mxu3 }
 0x89d   :  { %v586_v27 = vadd.f32 %v2010_v3, %v585_v26 }
 0x89f   :  { %1624 = vtanh.f32 %v586_v27  ;;  %v1521_v50 = vmul.f32 -1.442695, %v586_v27 }
 0x8a0   :  { %1626 = vpow2.f32 %v1523_v48 }
 0x8a1   :  { %1628 = vpow2.f32 %v1521_v50 }
 0x8a4   :  { %v587_v34 = vpop.f32.mrf.mxu3 }
 0x8a5   :  { %v1625_v47 = vpop.eup %1624 }
 0x8a6   :  { %611 = vrot.lane.b32.xlu2 %v1625_v47, %s1770_s22  ;;  %v1627_v49 = vpop.eup %1626 }
 0x8a7   :  { %v655_v51 = vadd.f32 1.0, %v1627_v49  ;;  %v1629_v52 = vpop.eup %1628 }
 0x8a8   :  { %v592_v54 = vadd.f32 1.0, %v1629_v52 }
 0x8a9   :  { %1630 = vrcp.f32 %v655_v51  ;;  %v667_v0 = vand.u32 2147483648, %v655_v51  ;;  %vm661_vm10 = vweird.f32 %v655_v51  ;;  %v665_v1 = vand.u32 2147483647, %v655_v51 }
 0x8aa   :  { %1632 = vrcp.f32 %v592_v54  ;;  %v604_v18 = vand.u32 2147483648, %v592_v54  ;;  %vm598_vm2 = vweird.f32 %v592_v54  ;;  %v602_v19 = vand.u32 2147483647, %v592_v54 }
 0x8ab   :  { %v668_v8 = vor.u32 1.1754944e-38, %v667_v0  ;;  %vm666_vm0 = vcmp.eq.f32.partialorder %v665_v1, 8.507059e+37 }
 0x8ac   :  { %v605_v21 = vor.u32 1.1754944e-38, %v604_v18  ;;  %vm603_vm7 = vcmp.eq.f32.partialorder %v602_v19, 8.507059e+37 }
 0x8af   :  { %v1631_v53 = vpop.eup %1630 }
 0x8b0   :  { %v657_v55 = vmul.f32 %v1631_v53, %v655_v51  ;;  %v1633_v57 = vpop.eup %1632  ;;  %vm662_vm9 = vweird.f32 %v1631_v53 }
 0x8b1   :  { %v594_v59 = vmul.f32 %v1633_v57, %v592_v54  ;;  %vm663_vm15 = vmor %vm661_vm10, %vm662_vm9  ;;  %vm599_vm1 = vweird.f32 %v1633_v57 }
 0x8b2   :  { %v658_v56 = vsub.f32 1.0, %v657_v55  ;;  %vm600_vm3 = vmor %vm598_vm2, %vm599_vm1 }
 0x8b3   :  { %v595_v4 = vsub.f32 1.0, %v594_v59 }
 0x8b4   :  { %v659_v58 = vmul.f32 %v1631_v53, %v658_v56 }
 0x8b5   :  { %v596_v12 = vmul.f32 %v1633_v57, %v595_v4 }
 0x8b6   :  { %v660_v61 = vadd.f32 %v1631_v53, %v659_v58 }
 0x8b7   :  { %v597_v17 = vadd.f32 %v1633_v57, %v596_v12 }
 0x8b8   :  { %v664_v5 = vsel %vm663_vm15, %v1631_v53, %v660_v61 }
 0x8b9   :  { %v669_v11 = vsel %vm666_vm0, %v668_v8, %v664_v5  ;;  %v601_v20 = vsel %vm600_vm3, %v1633_v57, %v597_v17 }
 0x8ba   :  { %v606_v23 = vsel %vm603_vm7, %v605_v21, %v601_v20  ;;  %v672_v29 = vmul.f32 %v669_v11, %v2063_v28 }
 0x8bb   :  { %v609_v31 = vmul.f32 %v606_v23, %v2058_v60 }
 0x8f5   :  { %v675_v10 = vpop.permute.xlu1 %674 }
 0x8f6   :  { %v677_v13 = vmul.f32 %v675_v10, %v669_v11 }
 0x8f8   :  { %679 = vrot.lane.b32.xlu0 %v677_v13, %s1771_s23 }
 0x900   :  { %v612_v22 = vpop.permute.xlu2 %611 }
 0x901   :  { %v614_v24 = vmul.f32 %v612_v22, %v606_v23 }
 0x903   :  { %616 = vrot.lane.b32.xlu1 %v614_v24, %s1771_s23 }
 0x96a   :  { %v680_v30 = vpop.permute.xlu0 %679 }
 0x96b   :  { %v2096_v2 = vadd.f32 %v680_v30, %v672_v29 }
 0x96d   :  { %1634 = vtanh.f32 %v2096_v2 }
 0x973   :  { %v1635_v35 = vpop.eup %1634 }
 0x974   :  { %685 = vrot.lane.b32.xlu2 %v1635_v35, %s1770_s22 }
 0x975   :  { %v617_v32 = vpop.permute.xlu1 %616 }
 0x976   :  { %v2101_v33 = vadd.f32 %v617_v32, %v609_v31 }
 0x978   :  { %1636 = vtanh.f32 %v2101_v33 }
 0x97e   :  { %v1637_v39 = vpop.eup %1636 }
 0x97f   :  { %622 = vrot.lane.b32.xlu0 %v1637_v39, %s1770_s22 }
 0x9ce   :  { %v686_v40 = vpop.permute.xlu2 %685 }
 0x9cf   :  { %v688_v28 = vmul.f32 %v686_v40, %v669_v11 }
 0x9d1   :  { %v689_v9 = vpack.c.bf16 %v688_v28, %v688_v28 }
 0x9d3   :  { %v691_v41 = vrot.slane %v689_v9, 3 }
 0x9d5   :  { %v694_v42 = vsel %vm253_vm11, %v689_v9, %v691_v41 }
 0x9d6   :  { %696 = vrot.lane.b32.xlu2 %v694_v42, %s1771_s23  ;;  %766 = vrot.lane.b32.xlu1 %v694_v42, %s1772_s28 }
 0x9f1   :  { %v623_v43 = vpop.permute.xlu0 %622 }
 0x9f2   :  { %v625_v60 = vmul.f32 %v623_v43, %v606_v23 }
 0x9f4   :  { %v700_v44 = vpack.c.bf16 %v625_v60, %v625_v60 }
 0x9f6   :  { %v702_v45 = vrot.slane %v700_v44, 3 }
 0x9f8   :  { %v705_v46 = vsel %vm253_vm11, %v700_v44, %v702_v45 }
 0x9f9   :  { %707 = vrot.lane.b32.xlu0 %v705_v46, %s1770_s22 }
 0xa30   :  { %v697_v14 = vpop.permute.xlu2 %696 }
 0xa31   :  { %699 = vst.msk [vmem:[#allocation3] sm:$0x1] %vm261_vm12, %v697_v14 }
 0xa48   :  { %v767_v15 = vpop.permute.xlu1 %766 }
 0xa49   :  { %769 = vst.msk [vmem:[#allocation2] sm:$0x1] %vm154_vm5, %v767_v15 }
 0xa50   :  { %v770_v16 = vld [vmem:[#allocation2] sm:$0x1] }
 0xa51   :  { %1526 = vmatmul.msk.bf16.vlgmr.msra.gmra.mxu3 %vm196_vm6, %v770_v16  ;;  %905 = vst.msk [vmem:[#allocation2] sm:$0x1] %vm152_vm4, %v1928_v36 }
 0xa6b   :  { %v708_v25 = vpop.permute.xlu0 %707 }
 0xa6c   :  { %710 = vst.msk [vmem:[#allocation3] sm:$0x1] %vm263_vm13, %v708_v25 }
 0xa73   :  { %v711_v26 = vld [vmem:[#allocation3] sm:$0x1] }
 0xa74   :  { %1524 = vmatmul.msk.bf16.vlgmr.msra.gmra.mxu2 %vm293_vm14, %v711_v26 }
 0xa75   :  { %1272 = vmatpush.bf16.msra.mxu2 %v1949_v62 }
 0xa79   :  { %1273 = vmatpush.bf16.msra.mxu2 %v1955_v63 }
 0xa7d   :  { %1274 = vmatpush.bf16.msra.mxu2 %v1970_v6 }
 0xa81   :  { %1275 = vmatpush.bf16.msra.mxu2 %v1979_v7 }
 0xad4   :  { %v783_v27 = vpop.f32.mrf.mxu3 }
 0xad5   :  { %v784_v34 = vadd.f32 %v1937_v38, %v783_v27 }
 0xad7   :  { %1638 = vtanh.f32 %v784_v34  ;;  %v1527_v63 = vmul.f32 -1.442695, %v784_v34 }
 0xadc   :  { %v785_v47 = vpop.f32.mrf.mxu3 }
 0xadd   :  { %v1639_v36 = vpop.eup %1638 }
 0xade   :  { %809 = vrot.lane.b32.xlu1 %v1639_v36, %s1770_s22 }
 0xaf7   :  { %v724_v48 = vpop.f32.mrf.mxu2 }
 0xaf8   :  { %v725_v49 = vadd.f32 %v2010_v3, %v724_v48 }
 0xafa   :  { %1640 = vtanh.f32 %v725_v49  ;;  %v1525_v7 = vmul.f32 -1.442695, %v725_v49 }
 0xafb   :  { %1642 = vpow2.f32 %v1527_v63 }
 0xafc   :  { %1644 = vpow2.f32 %v1525_v7 }
 0xaff   :  { %v726_v50 = vpop.f32.mrf.mxu2 }
 0xb00   :  { %v1641_v62 = vpop.eup %1640 }
 0xb01   :  { %750 = vrot.lane.b32.xlu2 %v1641_v62, %s1770_s22  ;;  %v1643_v6 = vpop.eup %1642 }
 0xb02   :  { %v790_v51 = vadd.f32 1.0, %v1643_v6  ;;  %v1645_v52 = vpop.eup %1644 }
 0xb03   :  { %v731_v54 = vadd.f32 1.0, %v1645_v52 }
 0xb04   :  { %1646 = vrcp.f32 %v790_v51  ;;  %v802_v0 = vand.u32 2147483648, %v790_v51  ;;  %vm796_vm9 = vweird.f32 %v790_v51  ;;  %v800_v1 = vand.u32 2147483647, %v790_v51 }
 0xb05   :  { %1648 = vrcp.f32 %v731_v54  ;;  %v743_v18 = vand.u32 2147483648, %v731_v54  ;;  %vm737_vm1 = vweird.f32 %v731_v54  ;;  %v741_v19 = vand.u32 2147483647, %v731_v54 }
 0xb06   :  { %v803_v8 = vor.u32 1.1754944e-38, %v802_v0  ;;  %vm801_vm15 = vcmp.eq.f32.partialorder %v800_v1, 8.507059e+37 }
 0xb07   :  { %v744_v21 = vor.u32 1.1754944e-38, %v743_v18  ;;  %vm742_vm3 = vcmp.eq.f32.partialorder %v741_v19, 8.507059e+37 }
 0xb0a   :  { %v1647_v53 = vpop.eup %1646 }
 0xb0b   :  { %v792_v55 = vmul.f32 %v1647_v53, %v790_v51  ;;  %v1649_v57 = vpop.eup %1648  ;;  %vm797_vm8 = vweird.f32 %v1647_v53 }
 0xb0c   :  { %v733_v59 = vmul.f32 %v1649_v57, %v731_v54  ;;  %vm798_vm10 = vmor %vm796_vm9, %vm797_vm8  ;;  %vm738_vm0 = vweird.f32 %v1649_v57 }
 0xb0d   :  { %v793_v56 = vsub.f32 1.0, %v792_v55  ;;  %vm739_vm2 = vmor %vm737_vm1, %vm738_vm0 }
 0xb0e   :  { %v734_v4 = vsub.f32 1.0, %v733_v59 }
 0xb0f   :  { %v794_v58 = vmul.f32 %v1647_v53, %v793_v56 }
 0xb10   :  { %v735_v12 = vmul.f32 %v1649_v57, %v734_v4 }
 0xb11   :  { %v795_v61 = vadd.f32 %v1647_v53, %v794_v58 }
 0xb12   :  { %v736_v17 = vadd.f32 %v1649_v57, %v735_v12 }
 0xb13   :  { %v799_v5 = vsel %vm798_vm10, %v1647_v53, %v795_v61 }
 0xb14   :  { %v804_v11 = vsel %vm801_vm15, %v803_v8, %v799_v5  ;;  %v740_v20 = vsel %vm739_vm2, %v1649_v57, %v736_v17 }
 0xb15   :  { %v745_v23 = vsel %vm742_vm3, %v744_v21, %v740_v20  ;;  %v807_v29 = vmul.f32 %v804_v11, %v2096_v2 }
 0xb16   :  { %v748_v32 = vmul.f32 %v745_v23, %v2101_v33 }
 0xb50   :  { %v810_v10 = vpop.permute.xlu1 %809 }
 0xb51   :  { %v812_v13 = vmul.f32 %v810_v10, %v804_v11 }
 0xb53   :  { %814 = vrot.lane.b32.xlu0 %v812_v13, %s1771_s23 }
 0xb5b   :  { %v751_v22 = vpop.permute.xlu2 %750 }
 0xb5c   :  { %v753_v24 = vmul.f32 %v751_v22, %v745_v23 }
 0xb5e   :  { %755 = vrot.lane.b32.xlu1 %v753_v24, %s1771_s23 }
 0xbc5   :  { %v815_v30 = vpop.permute.xlu0 %814 }
 0xbc6   :  { %v2128_v35 = vadd.f32 %v815_v30, %v807_v29 }
 0xbc8   :  { %1650 = vtanh.f32 %v2128_v35 }
 0xbce   :  { %v1651_v31 = vpop.eup %1650 }
 0xbcf   :  { %820 = vrot.lane.b32.xlu2 %v1651_v31, %s1770_s22 }
 0xbd0   :  { %v756_v39 = vpop.permute.xlu1 %755 }
 0xbd1   :  { %v2133_v40 = vadd.f32 %v756_v39, %v748_v32 }
 0xbd3   :  { %1652 = vtanh.f32 %v2133_v40 }
 0xbd9   :  { %v1653_v28 = vpop.eup %1652 }
 0xbda   :  { %761 = vrot.lane.b32.xlu0 %v1653_v28, %s1770_s22 }
 0xc29   :  { %v821_v9 = vpop.permute.xlu2 %820 }
 0xc2a   :  { %v823_v2 = vmul.f32 %v821_v9, %v804_v11 }
 0xc2c   :  { %v824_v41 = vpack.c.bf16 %v823_v2, %v823_v2 }
 0xc2e   :  { %v826_v42 = vrot.slane %v824_v41, 3 }
 0xc30   :  { %v829_v43 = vsel %vm253_vm11, %v824_v41, %v826_v42 }
 0xc31   :  { %831 = vrot.lane.b32.xlu2 %v829_v43, %s1771_s23  ;;  %906 = vrot.lane.b32.xlu1 %v829_v43, %s1772_s28 }
 0xc4c   :  { %v762_v60 = vpop.permute.xlu0 %761 }
 0xc4d   :  { %v764_v33 = vmul.f32 %v762_v60, %v745_v23 }
 0xc4f   :  { %v835_v44 = vpack.c.bf16 %v764_v33, %v764_v33 }
 0xc51   :  { %v837_v45 = vrot.slane %v835_v44, 3 }
 0xc53   :  { %v840_v46 = vsel %vm253_vm11, %v835_v44, %v837_v45 }
 0xc54   :  { %842 = vrot.lane.b32.xlu0 %v840_v46, %s1770_s22 }
 0xc8b   :  { %v832_v14 = vpop.permute.xlu2 %831 }
 0xc8c   :  { %834 = vst.msk [vmem:[#allocation3] sm:$0x1] %vm261_vm12, %v832_v14  ;;  %v1181_v14 = vld [vmem:[#allocation1 + $0x3] ss:$4 sm:$0xff] }
 0xca3   :  { %v907_v15 = vpop.permute.xlu1 %906 }
 0xca4   :  { %909 = vst.msk [vmem:[#allocation2] sm:$0x1] %vm154_vm5, %v907_v15 }
 0xcab   :  { %v910_v16 = vld [vmem:[#allocation2] sm:$0x1] }
 0xcac   :  { %1530 = vmatmul.msk.bf16.vlgmr.msrb.gmra.mxu2 %vm196_vm6, %v910_v16  ;;  %1044 = vst.msk [vmem:[#allocation2] sm:$0x1] %vm152_vm4, %v1931_v37 }
 0xcc6   :  { %v843_v25 = vpop.permute.xlu0 %842 }
 0xcc7   :  { %845 = vst.msk [vmem:[#allocation3] sm:$0x1] %vm263_vm13, %v843_v25 }
 0xcce   :  { %v846_v26 = vld [vmem:[#allocation3] sm:$0x1] }
 0xccf   :  { %1528 = vmatmul.msk.bf16.vlgmr.msra.gmra.mxu1 %vm293_vm14, %v846_v26 }
 0xd2f   :  { %v923_v27 = vpop.f32.mrf.mxu2 }
 0xd30   :  { %v924_v34 = vadd.f32 %v1937_v38, %v923_v27  ;;  %v2179_v27 = vld [vmem:[%s2268_s3] ss:$0 sm:$0xff] }
 0xd32   :  { %1654 = vtanh.f32 %v924_v34  ;;  %v1531_v62 = vmul.f32 -1.442695, %v924_v34 }
 0xd37   :  { %v925_v47 = vpop.f32.mrf.mxu2 }
 0xd38   :  { %v1655_v36 = vpop.eup %1654 }
 0xd39   :  { %949 = vrot.lane.b32.xlu1 %v1655_v36, %s1770_s22 }
 0xd4c   :  { %v859_v48 = vpop.f32.mrf.mxu1 }
 0xd4d   :  { %v860_v49 = vadd.f32 %v2010_v3, %v859_v48 }
 0xd4f   :  { %1656 = vtanh.f32 %v860_v49  ;;  %v1529_v63 = vmul.f32 -1.442695, %v860_v49 }
 0xd50   :  { %1658 = vpow2.f32 %v1531_v62 }
 0xd51   :  { %1660 = vpow2.f32 %v1529_v63 }
 0xd54   :  { %v861_v50 = vpop.f32.mrf.mxu1 }
 0xd55   :  { %v1657_v37 = vpop.eup %1656 }
 0xd56   :  { %885 = vrot.lane.b32.xlu2 %v1657_v37, %s1770_s22  ;;  %v1659_v6 = vpop.eup %1658 }
 0xd57   :  { %v930_v7 = vadd.f32 1.0, %v1659_v6  ;;  %v1661_v38 = vpop.eup %1660 }
 0xd58   :  { %v866_v51 = vadd.f32 1.0, %v1661_v38 }
 0xd59   :  { %1662 = vrcp.f32 %v930_v7  ;;  %v942_v61 = vand.u32 2147483648, %v930_v7  ;;  %vm936_vm8 = vweird.f32 %v930_v7  ;;  %v940_v1 = vand.u32 2147483647, %v930_v7 }
 0xd5a   :  { %1664 = vrcp.f32 %v866_v51  ;;  %v878_v10 = vand.u32 2147483648, %v866_v51  ;;  %vm872_vm0 = vweird.f32 %v866_v51  ;;  %v876_v13 = vand.u32 2147483647, %v866_v51 }
 0xd5b   :  { %v943_v5 = vor.u32 1.1754944e-38, %v942_v61  ;;  %vm941_vm15 = vcmp.eq.f32.partialorder %v940_v1, 8.507059e+37 }
 0xd5c   :  { %v879_v19 = vor.u32 1.1754944e-38, %v878_v10  ;;  %vm877_vm2 = vcmp.eq.f32.partialorder %v876_v13, 8.507059e+37 }
 0xd5f   :  { %v1663_v52 = vpop.eup %1662 }
 0xd60   :  { %v932_v53 = vmul.f32 %v1663_v52, %v930_v7  ;;  %v1665_v54 = vpop.eup %1664  ;;  %vm937_vm7 = vweird.f32 %v1663_v52 }
 0xd61   :  { %v868_v56 = vmul.f32 %v1665_v54, %v866_v51  ;;  %vm938_vm9 = vmor %vm936_vm8, %vm937_vm7  ;;  %vm873_vm10 = vweird.f32 %v1665_v54 }
 0xd62   :  { %v933_v55 = vsub.f32 1.0, %v932_v53  ;;  %vm874_vm1 = vmor %vm872_vm0, %vm873_vm10 }
 0xd63   :  { %v869_v58 = vsub.f32 1.0, %v868_v56 }
 0xd64   :  { %v934_v57 = vmul.f32 %v1663_v52, %v933_v55 }
 0xd65   :  { %v870_v0 = vmul.f32 %v1665_v54, %v869_v58 }
 0xd66   :  { %v935_v59 = vadd.f32 %v1663_v52, %v934_v57 }
 0xd67   :  { %v871_v8 = vadd.f32 %v1665_v54, %v870_v0 }
 0xd68   :  { %v939_v4 = vsel %vm938_vm9, %v1663_v52, %v935_v59 }
 0xd69   :  { %v944_v12 = vsel %vm941_vm15, %v943_v5, %v939_v4  ;;  %v875_v18 = vsel %vm874_vm1, %v1665_v54, %v871_v8 }
 0xd6a   :  { %v880_v21 = vsel %vm877_vm2, %v879_v19, %v875_v18  ;;  %v947_v23 = vmul.f32 %v944_v12, %v2128_v35 }
 0xd6b   :  { %v883_v30 = vmul.f32 %v880_v21, %v2133_v40 }
 0xdab   :  { %v950_v11 = vpop.permute.xlu1 %949 }
 0xdac   :  { %v952_v17 = vmul.f32 %v950_v11, %v944_v12 }
 0xdae   :  { %954 = vrot.lane.b32.xlu0 %v952_v17, %s1771_s23 }
 0xdb0   :  { %v886_v20 = vpop.permute.xlu2 %885 }
 0xdb1   :  { %v888_v22 = vmul.f32 %v886_v20, %v880_v21 }
 0xdb3   :  { %890 = vrot.lane.b32.xlu1 %v888_v22, %s1771_s23 }
 0xe20   :  { %v955_v24 = vpop.permute.xlu0 %954 }
 0xe21   :  { %v2156_v29 = vadd.f32 %v955_v24, %v947_v23 }
 0xe23   :  { %1666 = vtanh.f32 %v2156_v29 }
 0xe25   :  { %v891_v31 = vpop.permute.xlu1 %890 }
 0xe26   :  { %v2160_v32 = vadd.f32 %v891_v31, %v883_v30 }
 0xe28   :  { %1668 = vtanh.f32 %v2160_v32 }
 0xe29   :  { %v1667_v39 = vpop.eup %1666 }
 0xe2a   :  { %960 = vrot.lane.b32.xlu2 %v1667_v39, %s1770_s22 }
 0xe2e   :  { %v1669_v28 = vpop.eup %1668 }
 0xe2f   :  { %896 = vrot.lane.b32.xlu0 %v1669_v28, %s1770_s22 }
 0xe84   :  { %v961_v9 = vpop.permute.xlu2 %960 }
 0xe85   :  { %v963_v35 = vmul.f32 %v961_v9, %v944_v12 }
 0xe87   :  { %v964_v2 = vpack.c.bf16 %v963_v35, %v963_v35 }
 0xe89   :  { %v966_v41 = vrot.slane %v964_v2, 3 }
 0xe8b   :  { %v969_v42 = vsel %vm253_vm11, %v964_v2, %v966_v41 }
 0xe8c   :  { %1045 = vrot.lane.b32.xlu2 %v969_v42, %s1772_s28  ;;  %971 = vrot.lane.b32.xlu1 %v969_v42, %s1771_s23 }
 0xea1   :  { %v897_v40 = vpop.permute.xlu0 %896 }
 0xea2   :  { %v899_v43 = vmul.f32 %v897_v40, %v880_v21 }
 0xea4   :  { %v975_v60 = vpack.c.bf16 %v899_v43, %v899_v43 }
 0xea6   :  { %v977_v33 = vrot.slane %v975_v60, 3 }
 0xea8   :  { %v980_v44 = vsel %vm253_vm11, %v975_v60, %v977_v33 }
 0xea9   :  { %982 = vrot.lane.b32.xlu0 %v980_v44, %s1770_s22 }
 0xee6   :  { %v1046_v45 = vpop.permute.xlu2 %1045 }
 0xee7   :  { %1048 = vst.msk [vmem:[#allocation2] sm:$0x1] %vm154_vm5, %v1046_v45 }
 0xeee   :  { %v1049_v46 = vld [vmem:[#allocation2] sm:$0x1] }
 0xeef   :  { %1534 = vmatmul.msk.bf16.vlgmr.msrb.gmra.mxu1 %vm196_vm6, %v1049_v46  ;;  %1183 = vst.msk [vmem:[#allocation2] sm:$0x1] %vm152_vm4, %v1181_v14 }
 0xefe   :  { %v972_v15 = vpop.permute.xlu1 %971 }
 0xeff   :  { %974 = vst.msk [vmem:[#allocation3] sm:$0x1] %vm261_vm12, %v972_v15 }
 0xf1b   :  { %v983_v16 = vpop.permute.xlu0 %982 }
 0xf1c   :  { %985 = vst.msk [vmem:[#allocation3] sm:$0x1] %vm263_vm13, %v983_v16 }
 0xf23   :  { %v986_v25 = vld [vmem:[#allocation3] sm:$0x1] }
 0xf24   :  { %1532 = vmatmul.msk.bf16.vlgmr.msra.gmra.mxu0 %vm293_vm14, %v986_v25 }
 0xf6c   :  { %v1062_v26 = vpop.f32.mrf.mxu1 }
 0xf6d   :  { %v1063_v34 = vadd.f32 %v2179_v27, %v1062_v26 }
 0xf6f   :  { %1670 = vtanh.f32 %v1063_v34  ;;  %v1535_v62 = vmul.f32 -1.442695, %v1063_v34 }
 0xf74   :  { %v1064_v47 = vpop.f32.mrf.mxu1 }
 0xf75   :  { %v1671_v36 = vpop.eup %1670 }
 0xf76   :  { %1088 = vrot.lane.b32.xlu1 %v1671_v36, %s1770_s22  ;;  %v2212_v36 = vld [vmem:[%s2270_s5] ss:$0 sm:$0xff] }
 0xfa1   :  { %v999_v48 = vpop.f32.mrf.mxu0 }
 0xfa2   :  { %v1000_v49 = vadd.f32 %v2010_v3, %v999_v48 }
 0xfa4   :  { %1672 = vtanh.f32 %v1000_v49  ;;  %v1533_v51 = vmul.f32 -1.442695, %v1000_v49 }
 0xfa5   :  { %1674 = vpow2.f32 %v1535_v62 }
 0xfa9   :  { %v1001_v50 = vpop.f32.mrf.mxu0 }
 0xfaa   :  { %v1673_v37 = vpop.eup %1672 }
 0xfab   :  { %1025 = vrot.lane.b32.xlu2 %v1673_v37, %s1770_s22  ;;  %v1675_v63 = vpop.eup %1674 }
 0xfac   :  { %v1069_v6 = vadd.f32 1.0, %v1675_v63 }
 0xfae   :  { %1676 = vrcp.f32 %v1069_v6  ;;  %v1081_v3 = vand.u32 2147483648, %v1069_v6  ;;  %vm1075_vm3 = vweird.f32 %v1069_v6  ;;  %v1079_v56 = vand.u32 2147483647, %v1069_v6 }
 0xfaf   :  { %1678 = vpow2.f32 %v1533_v51 }
 0xfb0   :  { %v1082_v59 = vor.u32 1.1754944e-38, %v1081_v3  ;;  %vm1080_vm8 = vcmp.eq.f32.partialorder %v1079_v56, 8.507059e+37 }
 0xfb4   :  { %v1677_v7 = vpop.eup %1676 }
 0xfb5   :  { %v1071_v38 = vmul.f32 %v1677_v7, %v1069_v6  ;;  %vm1076_vm4 = vweird.f32 %v1677_v7  ;;  %v1679_v55 = vpop.eup %1678 }
 0xfb6   :  { %vm1077_vm7 = vmor %vm1075_vm3, %vm1076_vm4  ;;  %v1006_v57 = vadd.f32 1.0, %v1679_v55 }
 0xfb7   :  { %v1072_v52 = vsub.f32 1.0, %v1071_v38 }
 0xfb8   :  { %1680 = vrcp.f32 %v1006_v57  ;;  %v1018_v12 = vand.u32 2147483648, %v1006_v57  ;;  %vm1012_vm10 = vweird.f32 %v1006_v57  ;;  %v1016_v13 = vand.u32 2147483647, %v1006_v57 }
 0xfb9   :  { %v1073_v53 = vmul.f32 %v1677_v7, %v1072_v52 }
 0xfba   :  { %v1019_v18 = vor.u32 1.1754944e-38, %v1018_v12  ;;  %vm1017_vm0 = vcmp.eq.f32.partialorder %v1016_v13, 8.507059e+37 }
 0xfbb   :  { %v1074_v54 = vadd.f32 %v1677_v7, %v1073_v53 }
 0xfbd   :  { %v1078_v58 = vsel %vm1077_vm7, %v1677_v7, %v1074_v54 }
 0xfbe   :  { %v1083_v61 = vsel %vm1080_vm8, %v1082_v59, %v1078_v58  ;;  %v1681_v4 = vpop.eup %1680 }
 0xfbf   :  { %v1008_v5 = vmul.f32 %v1681_v4, %v1006_v57  ;;  %vm1013_vm9 = vweird.f32 %v1681_v4  ;;  %v1086_v22 = vmul.f32 %v1083_v61, %v2156_v29 }
 0xfc0   :  { %vm1014_vm15 = vmor %vm1012_vm10, %vm1013_vm9  ;;  %vm1384_vm9 = vcmask 254976   ;;  %vm1342_vm10 = vcmask 261120  }
 0xfc1   :  { %v1009_v8 = vsub.f32 1.0, %v1008_v5 }
 0xfc3   :  { %v1010_v10 = vmul.f32 %v1681_v4, %v1009_v8 }
 0xfc5   :  { %v1011_v11 = vadd.f32 %v1681_v4, %v1010_v10 }
 0xfc7   :  { %v1015_v17 = vsel %vm1014_vm15, %v1681_v4, %v1011_v11 }
 0xfc8   :  { %v1020_v20 = vsel %vm1017_vm0, %v1019_v18, %v1015_v17 }
 0xfc9   :  { %v1023_v31 = vmul.f32 %v1020_v20, %v2160_v32 }
 0xfe8   :  { %v1089_v0 = vpop.permute.xlu1 %1088 }
 0xfe9   :  { %v1091_v1 = vmul.f32 %v1089_v0, %v1083_v61 }
 0xfeb   :  { %1093 = vrot.lane.b32.xlu0 %v1091_v1, %s1771_s23 }
0x1005   :  { %v1026_v19 = vpop.permute.xlu2 %1025 }
0x1006   :  { %v1028_v21 = vmul.f32 %v1026_v19, %v1020_v20 }
0x1008   :  { %1030 = vrot.lane.b32.xlu1 %v1028_v21, %s1771_s23 }
0x105d   :  { %v1094_v23 = vpop.permute.xlu0 %1093 }
0x105e   :  { %v2188_v24 = vadd.f32 %v1094_v23, %v1086_v22 }
0x1060   :  { %1682 = vtanh.f32 %v2188_v24 }
0x1066   :  { %v1683_v30 = vpop.eup %1682 }
0x1067   :  { %1099 = vrot.lane.b32.xlu2 %v1683_v30, %s1770_s22 }
0x107a   :  { %v1031_v39 = vpop.permute.xlu1 %1030 }
0x107b   :  { %v2193_v28 = vadd.f32 %v1031_v39, %v1023_v31 }
0x107d   :  { %1684 = vtanh.f32 %v2193_v28 }
0x1083   :  { %v1685_v9 = vpop.eup %1684 }
0x1084   :  { %1036 = vrot.lane.b32.xlu0 %v1685_v9, %s1770_s22 }
0x10c1   :  { %v1100_v35 = vpop.permute.xlu2 %1099 }
0x10c2   :  { %v1102_v29 = vmul.f32 %v1100_v35, %v1083_v61 }
0x10c4   :  { %v1103_v2 = vpack.c.bf16 %v1102_v29, %v1102_v29 }
0x10c6   :  { %v1105_v41 = vrot.slane %v1103_v2, 3 }
0x10c8   :  { %v1108_v42 = vsel %vm253_vm11, %v1103_v2, %v1105_v41 }
0x10c9   :  { %1110 = vrot.lane.b32.xlu1 %v1108_v42, %s1771_s23  ;;  %1184 = vrot.lane.b32.xlu0 %v1108_v42, %s1772_s28 }
0x10f6   :  { %v1037_v40 = vpop.permute.xlu0 %1036 }
0x10f7   :  { %v1039_v32 = vmul.f32 %v1037_v40, %v1020_v20 }
0x10f9   :  { %v1114_v43 = vpack.c.bf16 %v1039_v32, %v1039_v32 }
0x10fb   :  { %v1116_v60 = vrot.slane %v1114_v43, 3 }
0x10fd   :  { %v1119_v33 = vsel %vm253_vm11, %v1114_v43, %v1116_v60 }
0x10fe   :  { %1121 = vrot.lane.b32.xlu2 %v1119_v33, %s1770_s22 }
0x113b   :  { %v1185_v44 = vpop.permute.xlu0 %1184  ;;  %v1111_v45 = vpop.permute.xlu1 %1110 }
0x113c   :  { %1187 = vst.msk [vmem:[#allocation2] sm:$0x1] %vm154_vm5, %v1185_v44 }
0x113d   :  { %1113 = vst.msk [vmem:[#allocation3] sm:$0x1] %vm261_vm12, %v1111_v45 }
0x1143   :  { %v1188_v46 = vld [vmem:[#allocation2] sm:$0x1] }
0x1144   :  { %1538 = vmatmul.msk.bf16.vlgmr.msrb.gmra.mxu0 %vm196_vm6, %v1188_v46 }
0x1158   :  { %v1122_v14 = vpop.permute.xlu2 %1121 }
0x1159   :  { %1124 = vst.msk [vmem:[#allocation3] sm:$0x1] %vm263_vm13, %v1122_v14 }
0x1160   :  { %v1125_v15 = vld [vmem:[#allocation3] sm:$0x1] }
0x1161   :  { %1536 = vmatmul.msk.bf16.vlgmr.msrb.gmra.mxu3 %vm293_vm14, %v1125_v15 }
0x11c1   :  { %v1201_v16 = vpop.f32.mrf.mxu0 }
0x11c2   :  { %v1202_v25 = vadd.f32 %v2179_v27, %v1201_v16 }
0x11c4   :  { %1686 = vtanh.f32 %v1202_v25  ;;  %v1539_v37 = vmul.f32 -1.442695, %v1202_v25 }
0x11c9   :  { %v1203_v26 = vpop.f32.mrf.mxu0 }
0x11ca   :  { %v1687_v34 = vpop.eup %1686 }
0x11cb   :  { %1227 = vrot.lane.b32.xlu1 %v1687_v34, %s1770_s22 }
0x11e4   :  { %v1138_v47 = vpop.f32.mrf.mxu3 }
0x11e5   :  { %v1139_v48 = vadd.f32 %v2212_v36, %v1138_v47 }
0x11e7   :  { %1688 = vtanh.f32 %v1139_v48  ;;  %v1537_v62 = vmul.f32 -1.442695, %v1139_v48 }
0x11e8   :  { %1690 = vpow2.f32 %v1539_v37 }
0x11e9   :  { %1692 = vpow2.f32 %v1537_v62 }
0x11ec   :  { %v1140_v49 = vpop.f32.mrf.mxu3 }
0x11ed   :  { %v1689_v50 = vpop.eup %1688 }
0x11ee   :  { %1164 = vrot.lane.b32.xlu2 %v1689_v50, %s1770_s22  ;;  %v1691_v27 = vpop.eup %1690 }
0x11ef   :  { %v1208_v63 = vadd.f32 1.0, %v1691_v27  ;;  %v1693_v6 = vpop.eup %1692 }
0x11f0   :  { %v1145_v38 = vadd.f32 1.0, %v1693_v6 }
0x11f1   :  { %1694 = vrcp.f32 %v1208_v63  ;;  %v1220_v56 = vand.u32 2147483648, %v1208_v63  ;;  %vm1214_vm6 = vweird.f32 %v1208_v63  ;;  %v1218_v57 = vand.u32 2147483647, %v1208_v63 }
0x11f2   :  { %1696 = vrcp.f32 %v1145_v38  ;;  %v1157_v10 = vand.u32 2147483648, %v1145_v38  ;;  %vm1151_vm3 = vweird.f32 %v1145_v38  ;;  %v1155_v11 = vand.u32 2147483647, %v1145_v38 }
0x11f3   :  { %v1221_v61 = vor.u32 1.1754944e-38, %v1220_v56  ;;  %vm1219_vm2 = vcmp.eq.f32.partialorder %v1218_v57, 8.507059e+37 }
0x11f4   :  { %v1158_v13 = vor.u32 1.1754944e-38, %v1157_v10  ;;  %vm1156_vm8 = vcmp.eq.f32.partialorder %v1155_v11, 8.507059e+37 }
0x11f7   :  { %v1695_v7 = vpop.eup %1694 }
0x11f8   :  { %v1210_v51 = vmul.f32 %v1695_v7, %v1208_v63  ;;  %v1697_v53 = vpop.eup %1696  ;;  %vm1215_vm5 = vweird.f32 %v1695_v7 }
0x11f9   :  { %v1147_v55 = vmul.f32 %v1697_v53, %v1145_v38  ;;  %vm1216_vm1 = vmor %vm1214_vm6, %vm1215_vm5  ;;  %vm1152_vm4 = vweird.f32 %v1697_v53  ;;  %vm1378_vm6 = vcmask 1024  }
0x11fa   :  { %v1211_v52 = vsub.f32 1.0, %v1210_v51  ;;  %vm1153_vm7 = vmor %vm1151_vm3, %vm1152_vm4 }
0x11fb   :  { %v1148_v58 = vsub.f32 1.0, %v1147_v55 }
0x11fc   :  { %v1212_v54 = vmul.f32 %v1695_v7, %v1211_v52 }
0x11fd   :  { %v1149_v4 = vmul.f32 %v1697_v53, %v1148_v58  ;;  %v1569_v58 = vld [vmem:[%s2271_s6 + $0x8] sm:$0xff] }
0x11fe   :  { %v1213_v3 = vadd.f32 %v1695_v7, %v1212_v54  ;;  %1352 = vmatpush.bf16.msra.mxu3 %v1569_v58 }
0x11ff   :  { %v1150_v8 = vadd.f32 %v1697_v53, %v1149_v4  ;;  %v1581_v4 = vld [vmem:[#allocation4] ss:$0 sm:$0xff] }
0x1200   :  { %v1217_v59 = vsel %vm1216_vm1, %v1695_v7, %v1213_v3 }
0x1201   :  { %v1222_v0 = vsel %vm1219_vm2, %v1221_v61, %v1217_v59  ;;  %v1154_v12 = vsel %vm1153_vm7, %v1697_v53, %v1150_v8  ;;  %v1568_v59 = vld [vmem:[%s2271_s6] sm:$0xff] }
0x1202   :  { %v1159_v18 = vsel %vm1156_vm8, %v1158_v13, %v1154_v12  ;;  %v1225_v20 = vmul.f32 %v1222_v0, %v2188_v24  ;;  %1353 = vmatpush.bf16.msra.mxu3 %v1568_v59 }
0x1203   :  { %v1162_v30 = vmul.f32 %v1159_v18, %v2193_v28 }
0x123d   :  { %v1228_v1 = vpop.permute.xlu1 %1227 }
0x123e   :  { %v1230_v5 = vmul.f32 %v1228_v1, %v1222_v0 }
0x1240   :  { %1232 = vrot.lane.b32.xlu0 %v1230_v5, %s1771_s23 }
0x1248   :  { %v1165_v17 = vpop.permute.xlu2 %1164 }
0x1249   :  { %v1167_v19 = vmul.f32 %v1165_v17, %v1159_v18 }
0x124b   :  { %1169 = vrot.lane.b32.xlu1 %v1167_v19, %s1771_s23 }
0x12b2   :  { %v1233_v21 = vpop.permute.xlu0 %1232 }
0x12b3   :  { %v2219_v22 = vadd.f32 %v1233_v21, %v1225_v20 }
0x12b5   :  { %1698 = vtanh.f32 %v2219_v22 }
0x12bb   :  { %v1699_v23 = vpop.eup %1698 }
0x12bc   :  { %1238 = vrot.lane.b32.xlu2 %v1699_v23, %s1770_s22 }
0x12bd   :  { %v1170_v31 = vpop.permute.xlu1 %1169 }
0x12be   :  { %v1172_v39 = vadd.f32 %v1170_v31, %v1162_v30 }
0x12c0   :  { %1700 = vtanh.f32 %v1172_v39 }
0x12c6   :  { %v1701_v9 = vpop.eup %1700 }
0x12c7   :  { %1175 = vrot.lane.b32.xlu0 %v1701_v9, %s1770_s22 }
0x1316   :  { %v1239_v35 = vpop.permute.xlu2 %1238 }
0x1317   :  { %v1241_v29 = vmul.f32 %v1239_v35, %v1222_v0 }
0x1319   :  { %v1242_v2 = vpack.c.bf16 %v1241_v29, %v1241_v29 }
0x131b   :  { %v1244_v24 = vrot.slane %v1242_v2, 3 }
0x131d   :  { %v1247_v41 = vsel %vm253_vm11, %v1242_v2, %v1244_v24 }
0x131e   :  { %1249 = vrot.lane.b32.xlu1 %v1247_v41, %s1771_s23 }
0x1339   :  { %v1176_v42 = vpop.permute.xlu0 %1175 }
0x133a   :  { %v1178_v40 = vmul.f32 %v1176_v42, %v1159_v18 }
0x133c   :  { %v1253_v32 = vpack.c.bf16 %v1178_v40, %v1178_v40 }
0x133e   :  { %v1255_v43 = vrot.slane %v1253_v32, 3 }
0x1340   :  { %v1258_v28 = vsel %vm253_vm11, %v1253_v32, %v1255_v43 }
0x1341   :  { %1260 = vrot.lane.b32.xlu2 %v1258_v28, %s1770_s22 }
0x1390   :  { %v1250_v60 = vpop.permute.xlu1 %1249 }
0x1391   :  { %1252 = vst.msk [vmem:[#allocation3] sm:$0x1] %vm261_vm12, %v1250_v60 }
0x139b   :  { %v1261_v33 = vpop.permute.xlu2 %1260 }
0x139c   :  { %1263 = vst.msk [vmem:[#allocation3] sm:$0x1] %vm263_vm13, %v1261_v33 }
0x13a3   :  { %v1264_v44 = vld [vmem:[#allocation3] sm:$0x1] }
0x13a4   :  { %1540 = vmatmul.msk.bf16.vlgmr.msra.gmra.mxu2 %vm293_vm14, %v1264_v44 }
0x1427   :  { %v1277_v45 = vpop.f32.mrf.mxu2 }
0x1428   :  { %v1278_v46 = vadd.f32 %v2212_v36, %v1277_v45 }
0x142a   :  { %1702 = vtanh.f32 %v1278_v46  ;;  %v1541_v16 = vmul.f32 -1.442695, %v1278_v46 }
0x142c   :  { %1704 = vpow2.f32 %v1541_v16 }
0x142f   :  { %v1279_v14 = vpop.f32.mrf.mxu2 }
0x1430   :  { %v1703_v15 = vpop.eup %1702 }
0x1431   :  { %1303 = vrot.lane.b32.xlu0 %v1703_v15, %s1770_s22 }
0x1432   :  { %v1705_v25 = vpop.eup %1704 }
0x1433   :  { %v1284_v26 = vadd.f32 1.0, %v1705_v25 }
0x1435   :  { %1706 = vrcp.f32 %v1284_v26  ;;  %v1296_v37 = vand.u32 2147483648, %v1284_v26  ;;  %vm1290_vm12 = vweird.f32 %v1284_v26  ;;  %v1294_v27 = vand.u32 2147483647, %v1284_v26 }
0x1437   :  { %v1297_v62 = vor.u32 1.1754944e-38, %v1296_v37  ;;  %vm1295_vm14 = vcmp.eq.f32.partialorder %v1294_v27, 8.507059e+37 }
0x143b   :  { %v1707_v34 = vpop.eup %1706 }
0x143c   :  { %v1286_v47 = vmul.f32 %v1707_v34, %v1284_v26  ;;  %vm1291_vm11 = vweird.f32 %v1707_v34 }
0x143d   :  { %vm1292_vm13 = vmor %vm1290_vm12, %vm1291_vm11 }
0x143e   :  { %v1287_v48 = vsub.f32 1.0, %v1286_v47 }
0x1440   :  { %v1288_v49 = vmul.f32 %v1707_v34, %v1287_v48 }
0x1442   :  { %v1289_v50 = vadd.f32 %v1707_v34, %v1288_v49 }
0x1444   :  { %v1293_v36 = vsel %vm1292_vm13, %v1707_v34, %v1289_v50 }
0x1445   :  { %v1298_v6 = vsel %vm1295_vm14, %v1297_v62, %v1293_v36 }
0x1446   :  { %v1301_v38 = vmul.f32 %v1298_v6, %v1172_v39 }
0x14a3   :  { %v1304_v63 = vpop.permute.xlu0 %1303 }
0x14a4   :  { %v1306_v7 = vmul.f32 %v1304_v63, %v1298_v6 }
0x14a6   :  { %1308 = vrot.lane.b32.xlu1 %v1306_v7, %s1771_s23 }
0x14ae   :  { %1381 = vrot.lane.b32.xlu1 %v1241_v29, %s1771_s23 }
0x1518   :  { %v1309_v51 = vpop.permute.xlu1 %1308 }
0x1519   :  { %v1311_v52 = vadd.f32 %v1309_v51, %v1301_v38 }
0x151b   :  { %1708 = vtanh.f32 %v1311_v52  ;;  %1398 = vrot.lane.b32.xlu1 %v1311_v52, %s1772_s28 }
0x1520   :  { %v1382_v53 = vpop.permute.xlu1 %1381 }
0x1521   :  { %v1709_v54 = vpop.eup %1708  ;;  %1385 = vst.msk [vmem:[#allocation5] sm:$0x3] %vm1384_vm9, %v1382_v53 }
0x1522   :  { %1314 = vrot.lane.b32.xlu2 %v1709_v54, %s1770_s22 }
0x157c   :  { %v1315_v55 = vpop.permute.xlu2 %1314 }
0x157d   :  { %v1317_v3 = vmul.f32 %v1315_v55, %v1298_v6 }
0x157f   :  { %v1318_v56 = vpack.c.bf16 %v1317_v3, %v1317_v3  ;;  %1387 = vrot.lane.b32.xlu2 %v1317_v3, %s1771_s23 }
0x1581   :  { %1328 = vrot.lane.b32.xlu0 %v1318_v56, %s1771_s23 }
0x1589   :  { %1393 = vrot.lane.b32.xlu0 %v2219_v22, %s1772_s28 }
0x158d   :  { %v1399_v57 = vpop.permute.xlu1 %1398 }
0x158e   :  { %1402 = vst.msk [vmem:[#allocation7 + $0x2] sm:$0x3] %vm1384_vm9, %v1399_v57 }
0x15d9   :  { %v1388_v61 = vpop.permute.xlu2 %1387 }
0x15da   :  { %1391 = vst.msk [vmem:[#allocation5 + $0x2] sm:$0x3] %vm1384_vm9, %v1388_v61 }
0x15db   :  { %1417 = dma.vmem_to_hbm [thread:$0]  %s1410_s2, 64, %s1412_s19, [#allocation6], %s1771_s23, %s1771_s23, %s1774_s21  }
0x15f3   :  { %v1329_v0 = vpop.permute.xlu0 %1328 }
0x15f4   :  { %1550 = vmatmul.msk.bf16.vlgmr.msra.gmra.mxu3 %vm1342_vm10, %v1329_v0 }
0x15fb   :  { %v1394_v1 = vpop.permute.xlu0 %1393 }
0x15fc   :  { %1396 = vst.msk [vmem:[#allocation7] sm:$0x3] %vm1384_vm9, %v1394_v1 }
0x15fd   :  { %1430 = dma.vmem_to_hbm [thread:$0]  %s1423_s26, 64, %s1425_s24, [#allocation8], %s1771_s23, %s1771_s23, %s1774_s21  }
0x1677   :  { %v1355_v5 = vpop.f32.mrf.mxu3 }
0x1678   :  { %v1356_v8 = vadd.f32 %v1581_v4, %v1355_v5 }
0x167a   :  { %v1551_v10 = vmul.f32 -1.442695, %v1356_v8 }
0x167c   :  { %1710 = vpow2.f32 %v1551_v10 }
0x167f   :  { %v1357_v11 = vpop.f32.mrf.mxu3 }
0x1682   :  { %v1711_v12 = vpop.eup %1710 }
0x1683   :  { %v1362_v13 = vadd.f32 1.0, %v1711_v12 }
0x1685   :  { %1712 = vrcp.f32 %v1362_v13  ;;  %v1374_v20 = vand.u32 2147483648, %v1362_v13  ;;  %v1372_v22 = vand.u32 2147483647, %v1362_v13  ;;  %vm1368_vm0 = vweird.f32 %v1362_v13 }
0x1687   :  { %v1375_v30 = vor.u32 1.1754944e-38, %v1374_v20  ;;  %vm1373_vm1 = vcmp.eq.f32.partialorder %v1372_v22, 8.507059e+37 }
0x168b   :  { %v1713_v17 = vpop.eup %1712 }
0x168c   :  { %v1364_v18 = vmul.f32 %v1713_v17, %v1362_v13  ;;  %vm1369_vm15 = vweird.f32 %v1713_v17 }
0x168d   :  { %vm1370_vm5 = vmor %vm1368_vm0, %vm1369_vm15 }
0x168e   :  { %v1365_v19 = vsub.f32 1.0, %v1364_v18 }
0x1690   :  { %v1366_v21 = vmul.f32 %v1713_v17, %v1365_v19 }
0x1692   :  { %v1367_v23 = vadd.f32 %v1713_v17, %v1366_v21 }
0x1694   :  { %v1371_v31 = vsel %vm1370_vm5, %v1713_v17, %v1367_v23 }
0x1695   :  { %v1376_v39 = vsel %vm1373_vm1, %v1375_v30, %v1371_v31 }
0x1696   :  { %1379 = vst.msk [vmem:[%s2273_s8] sm:$0x3] %vm1378_vm6, %v1376_v39 }
0x1697   :  { %1764 = dma.done.wait [#allocation6], 64  }
0x1698   :  { %1765 = vsyncadd [#allocation6], 4294967232 }
0x1699   :  { %1766 = dma.done.wait [#allocation8], 64  }
0x169a   :  { %1767 = vsyncadd [#allocation8], 4294967232 }
0x169b   :  { %1441 = vsyncpa [#allocation6], 1 }
0x169c   :  { %1442 = vsyncpa [#allocation8], 1 }

</bundles_post_ra>
